<compile_context>
chip_gen: v7x
topology: tpu7x:2x2x1
jax: 0.10.0
libtpu: 0.0.40
codegen_flags: <defaults>
</compile_context>

<pallas_src>
import functools
import math

import jax
import jax.numpy as jnp
from jax.experimental import pallas as pl
from jax.experimental.pallas import tpu as pltpu

# ----------------------------- model hyper-params (small, aligned) ------------
B = 2
L_Q = 128          # analog of 2048 query tokens
L_KV = 8           # analog of kv sequence length
EMBED_DIM = 128    # analog of 768
NUM_HEADS = 4      # analog of 8
HEAD_DIM = EMBED_DIM // NUM_HEADS
KV_IN = 256        # analog of the 2048-dim kv input features
LN_EPS = 1e-5


def _eca_kernel(q_ref, kv_ref,
                wk_ref, bk_ref,              # k_proj  (KV_IN, D), (1, D)
                g_kv_ref, b_kv_ref,          # norm_kv gamma/beta (used for K only)
                wq_ref, bq_ref,              # q_proj  with norm_q affine + 1/sqrt(hd) folded in
                wv_ref, bv_ref,              # v_proj  with norm_kv affine folded in
                wo_ref, bo_ref,              # out_proj (D, D), (1, D)
                mask_ref, sum_ref, exp_ref,  # block-diagonal helper constants
                out_ref,
                *, bb, lq, lkv, nheads):
    f32 = jnp.float32

    q = q_ref[...]         # (bb*lq, D)      already f32, no redundant astype
    kv = kv_ref[...]       # (bb*lkv, KV_IN)

    # ---- LayerNorm(query); affine folded into (wq, bq) host-side -------------
    mu = jnp.mean(q, axis=-1, keepdims=True)
    var = jnp.mean(jnp.square(q - mu), axis=-1, keepdims=True)
    qn = (q - mu) * jax.lax.rsqrt(var + LN_EPS)

    # ---- kn = LayerNorm(k_proj(kv)); affine applied only for K ---------------
    kp = jnp.dot(kv, wk_ref[...], preferred_element_type=f32) + bk_ref[...]
    mu_k = jnp.mean(kp, axis=-1, keepdims=True)
    var_k = jnp.mean(jnp.square(kp - mu_k), axis=-1, keepdims=True)
    kn = (kp - mu_k) * jax.lax.rsqrt(var_k + LN_EPS)

    K = kn * g_kv_ref[...] + b_kv_ref[...]                                  # (bb*lkv, D)
    V = jnp.dot(kn, wv_ref[...], preferred_element_type=f32) + bv_ref[...]  # (bb*lkv, D)
    Q = jnp.dot(qn, wq_ref[...], preferred_element_type=f32) + bq_ref[...]  # pre-scaled

    mask = mask_ref[...]      # (H*lkv, D)  1 where column d belongs to row j's head
    sum_mat = sum_ref[...]    # (H*lkv, H)  per-head lane-group summation
    expand = exp_ref[...]     # (H, D)      per-head scalar -> per-column broadcast
    wo = wo_ref[...]          # hoisted out of the batch loop
    bo = bo_ref[...]

    nt = (((1,), (1,)), ((), ()))   # contract last dims of both operands (no transpose)
    for b in range(bb):             # static unroll; K/V differ per batch
        Qb = Q[b * lq:(b + 1) * lq]         # (lq, D)   sublane-aligned static slices
        Kb = K[b * lkv:(b + 1) * lkv]       # (lkv, D)
        Vb = V[b * lkv:(b + 1) * lkv]       # (lkv, D)

        # block-diagonal (by head) K / V panels: row j = head j//lkv, key j%lkv
        K_bd = jnp.concatenate([Kb] * nheads, axis=0) * mask   # (H*lkv, D)
        V_bd = jnp.concatenate([Vb] * nheads, axis=0) * mask   # (H*lkv, D)

        # all heads' scores in one matmul: column h*lkv + k = <Q_h, K_h[k]>
        s = jax.lax.dot_general(Qb, K_bd, nt, preferred_element_type=f32)   # (lq, H*lkv)

        # per-head softmax; subtracting the global row max is an exact shift
        m = jnp.max(s, axis=-1, keepdims=True)
        p = jnp.exp(s - m)
        denom = jnp.dot(p, sum_mat, preferred_element_type=f32)             # (lq, H)
        inv = pl.reciprocal(denom, approx=True)                             # EUP slot

        o = jnp.dot(p, V_bd, preferred_element_type=f32)                    # (lq, D), heads concatenated
        attn_b = o * jnp.dot(inv, expand, preferred_element_type=f32)       # normalized per head

        out_b = jnp.dot(attn_b, wo, preferred_element_type=f32) + bo        # (lq, D)
        # lane-dense, sublane-aligned direct store (no cross-batch concat)
        out_ref[b * lq:(b + 1) * lq, :] = out_b.astype(out_ref.dtype)


def _single_tensorcore() -> bool:
    """True for single-TC chips (v5e/v6e): fold the batch into one grid step."""
    try:
        kind = jax.devices()[0].device_kind.lower()
    except Exception:
        return True
    # v7x (and v4/v5p-class megacore parts) expose 2 TensorCores per device.
    return not any(m in kind for m in ("v7", "7x", "v4", "v5p"))


def efficient_cross_attention(query, kv, params, *, batch_block=None):
    """query: (B, L_q, D) f32; kv: (B, L_kv, KV_IN) f32; returns (B, L_q, D) f32."""
    Bq, Lq, D = query.shape
    _, Lkv, Dkv = kv.shape
    H = NUM_HEADS
    HD = D // H

    (g_q, b_q_ln, wk, bk, g_kv, b_kv_ln, wq, bq, wv, bv, wo, bo) = params

    # ---- host-side precompute (zero kernel cost) ------------------------------
    scale = 1.0 / math.sqrt(HD)
    wq_f = (g_q.reshape(D, 1) * wq) * scale        # fold norm_q affine + QK^T scale
    bq_f = (b_q_ln @ wq + bq) * scale
    wv_f = g_kv.reshape(D, 1) * wv                 # fold norm_kv affine into V path
    bv_f = b_kv_ln @ wv + bv

    # block-diagonal helper constants (head structure as 0/1 matrices)
    j = jnp.arange(H * Lkv)[:, None]
    dcol = jnp.arange(D)[None, :]
    mask = (j // Lkv == dcol // HD).astype(jnp.float32)                   # (H*Lkv, D)
    sum_mat = (j // Lkv == jnp.arange(H)[None, :]).astype(jnp.float32)    # (H*Lkv, H)
    expand = (jnp.arange(H)[:, None] == dcol // HD).astype(jnp.float32)   # (H, D)

    # chip-aware batching: fold B on single-TC chips, parallel grid on dual-TC.
    if batch_block is None:
        batch_block = Bq if _single_tensorcore() else 1
    bb = batch_block if (0 < batch_block <= Bq and Bq % batch_block == 0) else 1
    grid = (Bq // bb,)

    # host-side reshapes are free; the kernel only sees lane-dense 2-D slabs
    q2 = query.reshape(Bq * Lq, D)
    kv2 = kv.reshape(Bq * Lkv, Dkv)

    full = lambda shape: pl.BlockSpec(shape, lambda i: (0,) * len(shape))
    in_specs = [
        pl.BlockSpec((bb * Lq, D), lambda i: (i, 0)),
        pl.BlockSpec((bb * Lkv, Dkv), lambda i: (i, 0)),
        full((Dkv, D)), full((1, D)),        # k_proj
        full((1, D)), full((1, D)),          # norm_kv gamma/beta (for K)
        full((D, D)), full((1, D)),          # q_proj (folded, pre-scaled)
        full((D, D)), full((1, D)),          # v_proj (folded)
        full((D, D)), full((1, D)),          # out_proj
        full((H * Lkv, D)),                  # mask
        full((H * Lkv, H)),                  # sum_mat
        full((H, D)),                        # expand
    ]

    kernel = functools.partial(_eca_kernel, bb=bb, lq=Lq, lkv=Lkv, nheads=H)
    out2 = pl.pallas_call(
        kernel,
        out_shape=jax.ShapeDtypeStruct((Bq * Lq, D), jnp.float32),
        grid=grid,
        in_specs=in_specs,
        out_specs=pl.BlockSpec((bb * Lq, D), lambda i: (i, 0)),
        compiler_params=pltpu.CompilerParams(
            dimension_semantics=("parallel",)),
    )(q2, kv2, wk, bk, g_kv, b_kv_ln, wq_f, bq_f, wv_f, bv_f, wo, bo,
      mask, sum_mat, expand)
    return out2.reshape(Bq, Lq, D)


# ----------------------------- reference (pure JAX, unfolded params) ----------
def _layernorm(x, g, b):
    mu = jnp.mean(x, axis=-1, keepdims=True)
    var = jnp.mean((x - mu) ** 2, axis=-1, keepdims=True)
    return (x - mu) / jnp.sqrt(var + LN_EPS) * g + b


def _reference(query, kv, params):
    (g_q, b_q_ln, wk, bk, g_kv, b_kv_ln,
     wq, bq, wv, bv, wo, bo) = params
    qn = _layernorm(query, g_q, b_q_ln)
    k = _layernorm(kv @ wk + bk, g_kv, b_kv_ln)
    Q = qn @ wq + bq
    K = k
    V = k @ wv + bv

    def heads(x):
        b, l, _ = x.shape
        return x.reshape(b, l, NUM_HEADS, HEAD_DIM).transpose(0, 2, 1, 3)

    Qh, Kh, Vh = heads(Q), heads(K), heads(V)
    s = jnp.einsum("bhqd,bhkd->bhqk", Qh, Kh) / math.sqrt(HEAD_DIM)
    p = jax.nn.softmax(s, axis=-1)
    o = jnp.einsum("bhqk,bhkd->bhqd", p, Vh)
    o = o.transpose(0, 2, 1, 3).reshape(query.shape[0], query.shape[1], EMBED_DIM)
    return o @ wo + bo


# ----------------------------- deterministic parameter init --------------------
def _init_params(key):
    ks = jax.random.split(key, 8)

    def linear(k, fan_in, fan_out):
        bound = 1.0 / math.sqrt(fan_in)
        w = jax.random.uniform(k, (fan_in, fan_out), jnp.float32, -bound, bound)
        b = jax.random.uniform(jax.random.fold_in(k, 1), (1, fan_out),
                               jnp.float32, -bound, bound)
        return w, b

    wk, bk = linear(ks[0], KV_IN, EMBED_DIM)      # k_proj : Linear(2048 -> D) analog
    wq, bq = linear(ks[1], EMBED_DIM, EMBED_DIM)  # q_proj
    wv, bv = linear(ks[2], EMBED_DIM, EMBED_DIM)  # v_proj (see TODO above)
    wo, bo = linear(ks[3], EMBED_DIM, EMBED_DIM)  # out_proj
    g_q = jnp.ones((1, EMBED_DIM), jnp.float32)
    b_q_ln = jnp.zeros((1, EMBED_DIM), jnp.float32)
    g_kv = jnp.ones((1, EMBED_DIM), jnp.float32)
    b_kv_ln = jnp.zeros((1, EMBED_DIM), jnp.float32)
    return (g_q, b_q_ln, wk, bk, g_kv, b_kv_ln, wq, bq, wv, bv, wo, bo)


if __name__ == "__main__":
    key = jax.random.PRNGKey(0)
    k_q, k_kv, k_p = jax.random.split(key, 3)

    query = jax.random.normal(k_q, (B, L_Q, EMBED_DIM), jnp.float32)
    kv = jax.random.normal(k_kv, (B, L_KV, KV_IN), jnp.float32)
    params = _init_params(k_p)

    out = efficient_cross_attention(query, kv, params)
    out = jax.block_until_ready(out)

    ref = _reference(query, kv, params)
    assert out.shape == (B, L_Q, EMBED_DIM)
    err = float(jnp.max(jnp.abs(out - ref)))
    # 5e-3 tolerance: pl.reciprocal(approx=True) in the softmax denominator is the
    # only approximate op; all matmuls accumulate in f32.
    assert err < 5e-3, f"Pallas output mismatch vs JAX reference: {err}"

    print("KERNEL_OK")
</pallas_src>

<mosaic_0001>
module attributes {stable_mosaic.version = 11 : i64} {
  func.func @_eca_kernel(%arg0: i32, %arg1: memref<256x128xf32, #tpu.memory_space<vmem>>, %arg2: memref<16x256xf32, #tpu.memory_space<vmem>>, %arg3: memref<256x128xf32, #tpu.memory_space<vmem>>, %arg4: memref<1x128xf32, #tpu.memory_space<vmem>>, %arg5: memref<1x128xf32, #tpu.memory_space<vmem>>, %arg6: memref<1x128xf32, #tpu.memory_space<vmem>>, %arg7: memref<128x128xf32, #tpu.memory_space<vmem>>, %arg8: memref<1x128xf32, #tpu.memory_space<vmem>>, %arg9: memref<128x128xf32, #tpu.memory_space<vmem>>, %arg10: memref<1x128xf32, #tpu.memory_space<vmem>>, %arg11: memref<128x128xf32, #tpu.memory_space<vmem>>, %arg12: memref<1x128xf32, #tpu.memory_space<vmem>>, %arg13: memref<32x128xf32, #tpu.memory_space<vmem>>, %arg14: memref<32x4xf32, #tpu.memory_space<vmem>>, %arg15: memref<4x128xf32, #tpu.memory_space<vmem>>, %arg16: memref<256x128xf32, #tpu.memory_space<vmem>>) attributes {dimension_semantics = [#tpu.dimension_semantics<parallel>], iteration_bounds = array<i64: 1>, scalar_prefetch = 0 : i64, scratch_operands = 0 : i64, tpu.core_type = #tpu.core_type<tc>, window_params = [{transform_indices = @transform_0, window_bounds = array<i64: 256, 128>}, {transform_indices = @transform_1, window_bounds = array<i64: 16, 256>}, {pipeline_mode = #tpu.pipeline_mode<synchronous>, transform_indices = @transform_2, window_bounds = array<i64: 256, 128>}, {pipeline_mode = #tpu.pipeline_mode<synchronous>, transform_indices = @transform_3, window_bounds = array<i64: 1, 128>}, {pipeline_mode = #tpu.pipeline_mode<synchronous>, transform_indices = @transform_4, window_bounds = array<i64: 1, 128>}, {pipeline_mode = #tpu.pipeline_mode<synchronous>, transform_indices = @transform_5, window_bounds = array<i64: 1, 128>}, {pipeline_mode = #tpu.pipeline_mode<synchronous>, transform_indices = @transform_6, window_bounds = array<i64: 128, 128>}, {pipeline_mode = #tpu.pipeline_mode<synchronous>, transform_indices = @transform_7, window_bounds = array<i64: 1, 128>}, {pipeline_mode = #tpu.pipeline_mode<synchronous>, transform_indices = @transform_8, window_bounds = array<i64: 128, 128>}, {pipeline_mode = #tpu.pipeline_mode<synchronous>, transform_indices = @transform_9, window_bounds = array<i64: 1, 128>}, {pipeline_mode = #tpu.pipeline_mode<synchronous>, transform_indices = @transform_10, window_bounds = array<i64: 128, 128>}, {pipeline_mode = #tpu.pipeline_mode<synchronous>, transform_indices = @transform_11, window_bounds = array<i64: 1, 128>}, {pipeline_mode = #tpu.pipeline_mode<synchronous>, transform_indices = @transform_12, window_bounds = array<i64: 32, 128>}, {pipeline_mode = #tpu.pipeline_mode<synchronous>, transform_indices = @transform_13, window_bounds = array<i64: 32, 4>}, {pipeline_mode = #tpu.pipeline_mode<synchronous>, transform_indices = @transform_14, window_bounds = array<i64: 4, 128>}, {transform_indices = @transform_15, window_bounds = array<i64: 256, 128>}]} {
    %c0 = arith.constant 0 : index
    %c0_0 = arith.constant 0 : index
    %0 = vector.load %arg1[%c0, %c0_0] : memref<256x128xf32, #tpu.memory_space<vmem>>, vector<256x128xf32>
    %c0_1 = arith.constant 0 : index
    %c0_2 = arith.constant 0 : index
    %1 = vector.load %arg2[%c0_1, %c0_2] : memref<16x256xf32, #tpu.memory_space<vmem>>, vector<16x256xf32>
    %cst = arith.constant dense<0.000000e+00> : vector<256xf32>
    %2 = vector.multi_reduction <add>, %0, %cst [1] : vector<256x128xf32> to vector<256xf32>
    %3 = vector.shape_cast %2 : vector<256xf32> to vector<256x1xf32>
    %cst_3 = arith.constant 1.280000e+02 : f32
    %4 = vector.broadcast %cst_3 : f32 to vector<256x1xf32>
    %5 = arith.divf %3, %4 : vector<256x1xf32>
    %6 = vector.broadcast %5 : vector<256x1xf32> to vector<256x128xf32>
    %7 = arith.subf %0, %6 : vector<256x128xf32>
    %8 = arith.mulf %7, %7 : vector<256x128xf32>
    %cst_4 = arith.constant dense<0.000000e+00> : vector<256xf32>
    %9 = vector.multi_reduction <add>, %8, %cst_4 [1] : vector<256x128xf32> to vector<256xf32>
    %10 = vector.shape_cast %9 : vector<256xf32> to vector<256x1xf32>
    %cst_5 = arith.constant 1.280000e+02 : f32
    %11 = vector.broadcast %cst_5 : f32 to vector<256x1xf32>
    %12 = arith.divf %10, %11 : vector<256x1xf32>
    %13 = vector.broadcast %5 : vector<256x1xf32> to vector<256x128xf32>
    %14 = arith.subf %0, %13 : vector<256x128xf32>
    %cst_6 = arith.constant 9.99999974E-6 : f32
    %15 = vector.broadcast %cst_6 : f32 to vector<256x1xf32>
    %16 = arith.addf %12, %15 : vector<256x1xf32>
    %17 = math.rsqrt %16 : vector<256x1xf32>
    %18 = vector.broadcast %17 : vector<256x1xf32> to vector<256x128xf32>
    %19 = arith.mulf %14, %18 : vector<256x128xf32>
    %c0_7 = arith.constant 0 : index
    %c0_8 = arith.constant 0 : index
    %20 = vector.load %arg3[%c0_7, %c0_8] : memref<256x128xf32, #tpu.memory_space<vmem>>, vector<256x128xf32>
    %cst_9 = arith.constant dense<0.000000e+00> : vector<16x128xf32>
    %21 = tpu.matmul %1, %20, %cst_9 {dimension_numbers = #tpu.dot_dimension_numbers<[1], [0], [0], [1], [0, 0, 1, 1], [], []>} : vector<16x256xf32>, vector<256x128xf32>, vector<16x128xf32> -> vector<16x128xf32>
    %c0_10 = arith.constant 0 : index
    %c0_11 = arith.constant 0 : index
    %22 = vector.load %arg4[%c0_10, %c0_11] : memref<1x128xf32, #tpu.memory_space<vmem>>, vector<1x128xf32>
    %23 = vector.broadcast %22 : vector<1x128xf32> to vector<16x128xf32>
    %24 = arith.addf %21, %23 : vector<16x128xf32>
    %cst_12 = arith.constant dense<0.000000e+00> : vector<16xf32>
    %25 = vector.multi_reduction <add>, %24, %cst_12 [1] : vector<16x128xf32> to vector<16xf32>
    %26 = vector.shape_cast %25 : vector<16xf32> to vector<16x1xf32>
    %cst_13 = arith.constant 1.280000e+02 : f32
    %27 = vector.broadcast %cst_13 : f32 to vector<16x1xf32>
    %28 = arith.divf %26, %27 : vector<16x1xf32>
    %29 = vector.broadcast %28 : vector<16x1xf32> to vector<16x128xf32>
    %30 = arith.subf %24, %29 : vector<16x128xf32>
    %31 = arith.mulf %30, %30 : vector<16x128xf32>
    %cst_14 = arith.constant dense<0.000000e+00> : vector<16xf32>
    %32 = vector.multi_reduction <add>, %31, %cst_14 [1] : vector<16x128xf32> to vector<16xf32>
    %33 = vector.shape_cast %32 : vector<16xf32> to vector<16x1xf32>
    %cst_15 = arith.constant 1.280000e+02 : f32
    %34 = vector.broadcast %cst_15 : f32 to vector<16x1xf32>
    %35 = arith.divf %33, %34 : vector<16x1xf32>
    %36 = vector.broadcast %28 : vector<16x1xf32> to vector<16x128xf32>
    %37 = arith.subf %24, %36 : vector<16x128xf32>
    %cst_16 = arith.constant 9.99999974E-6 : f32
    %38 = vector.broadcast %cst_16 : f32 to vector<16x1xf32>
    %39 = arith.addf %35, %38 : vector<16x1xf32>
    %40 = math.rsqrt %39 : vector<16x1xf32>
    %41 = vector.broadcast %40 : vector<16x1xf32> to vector<16x128xf32>
    %42 = arith.mulf %37, %41 : vector<16x128xf32>
    %c0_17 = arith.constant 0 : index
    %c0_18 = arith.constant 0 : index
    %43 = vector.load %arg5[%c0_17, %c0_18] : memref<1x128xf32, #tpu.memory_space<vmem>>, vector<1x128xf32>
    %44 = vector.broadcast %43 : vector<1x128xf32> to vector<16x128xf32>
    %45 = arith.mulf %42, %44 : vector<16x128xf32>
    %c0_19 = arith.constant 0 : index
    %c0_20 = arith.constant 0 : index
    %46 = vector.load %arg6[%c0_19, %c0_20] : memref<1x128xf32, #tpu.memory_space<vmem>>, vector<1x128xf32>
    %47 = vector.broadcast %46 : vector<1x128xf32> to vector<16x128xf32>
    %48 = arith.addf %45, %47 : vector<16x128xf32>
    %c0_21 = arith.constant 0 : index
    %c0_22 = arith.constant 0 : index
    %49 = vector.load %arg9[%c0_21, %c0_22] : memref<128x128xf32, #tpu.memory_space<vmem>>, vector<128x128xf32>
    %cst_23 = arith.constant dense<0.000000e+00> : vector<16x128xf32>
    %50 = tpu.matmul %42, %49, %cst_23 {dimension_numbers = #tpu.dot_dimension_numbers<[1], [0], [0], [1], [0, 0, 1, 1], [], []>} : vector<16x128xf32>, vector<128x128xf32>, vector<16x128xf32> -> vector<16x128xf32>
    %c0_24 = arith.constant 0 : index
    %c0_25 = arith.constant 0 : index
    %51 = vector.load %arg10[%c0_24, %c0_25] : memref<1x128xf32, #tpu.memory_space<vmem>>, vector<1x128xf32>
    %52 = vector.broadcast %51 : vector<1x128xf32> to vector<16x128xf32>
    %53 = arith.addf %50, %52 : vector<16x128xf32>
    %c0_26 = arith.constant 0 : index
    %c0_27 = arith.constant 0 : index
    %54 = vector.load %arg7[%c0_26, %c0_27] : memref<128x128xf32, #tpu.memory_space<vmem>>, vector<128x128xf32>
    %cst_28 = arith.constant dense<0.000000e+00> : vector<256x128xf32>
    %55 = tpu.matmul %19, %54, %cst_28 {dimension_numbers = #tpu.dot_dimension_numbers<[1], [0], [0], [1], [0, 0, 1, 1], [], []>} : vector<256x128xf32>, vector<128x128xf32>, vector<256x128xf32> -> vector<256x128xf32>
    %c0_29 = arith.constant 0 : index
    %c0_30 = arith.constant 0 : index
    %56 = vector.load %arg8[%c0_29, %c0_30] : memref<1x128xf32, #tpu.memory_space<vmem>>, vector<1x128xf32>
    %57 = vector.broadcast %56 : vector<1x128xf32> to vector<256x128xf32>
    %58 = arith.addf %55, %57 : vector<256x128xf32>
    %c0_31 = arith.constant 0 : index
    %c0_32 = arith.constant 0 : index
    %59 = vector.load %arg13[%c0_31, %c0_32] : memref<32x128xf32, #tpu.memory_space<vmem>>, vector<32x128xf32>
    %c0_33 = arith.constant 0 : index
    %c0_34 = arith.constant 0 : index
    %60 = vector.load %arg14[%c0_33, %c0_34] : memref<32x4xf32, #tpu.memory_space<vmem>>, vector<32x4xf32>
    %c0_35 = arith.constant 0 : index
    %c0_36 = arith.constant 0 : index
    %61 = vector.load %arg15[%c0_35, %c0_36] : memref<4x128xf32, #tpu.memory_space<vmem>>, vector<4x128xf32>
    %c0_37 = arith.constant 0 : index
    %c0_38 = arith.constant 0 : index
    %62 = vector.load %arg11[%c0_37, %c0_38] : memref<128x128xf32, #tpu.memory_space<vmem>>, vector<128x128xf32>
    %c0_39 = arith.constant 0 : index
    %c0_40 = arith.constant 0 : index
    %63 = vector.load %arg12[%c0_39, %c0_40] : memref<1x128xf32, #tpu.memory_space<vmem>>, vector<1x128xf32>
    %64 = vector.extract_strided_slice %58 {offsets = [0, 0], sizes = [128, 128], strides = [1, 1]} : vector<256x128xf32> to vector<128x128xf32>
    %65 = vector.extract_strided_slice %48 {offsets = [0, 0], sizes = [8, 128], strides = [1, 1]} : vector<16x128xf32> to vector<8x128xf32>
    %66 = vector.extract_strided_slice %53 {offsets = [0, 0], sizes = [8, 128], strides = [1, 1]} : vector<16x128xf32> to vector<8x128xf32>
    %67 = tpu.concatenate %65, %65, %65, %65 in 0 : vector<8x128xf32>, vector<8x128xf32>, vector<8x128xf32>, vector<8x128xf32> -> vector<32x128xf32>
    %68 = arith.mulf %67, %59 : vector<32x128xf32>
    %69 = tpu.concatenate %66, %66, %66, %66 in 0 : vector<8x128xf32>, vector<8x128xf32>, vector<8x128xf32>, vector<8x128xf32> -> vector<32x128xf32>
    %70 = arith.mulf %69, %59 : vector<32x128xf32>
    %cst_41 = arith.constant dense<0.000000e+00> : vector<128x32xf32>
    %71 = tpu.matmul %64, %68, %cst_41 {dimension_numbers = #tpu.dot_dimension_numbers<[1], [1], [0], [0], [0, 0, 1, 0], [], []>} : vector<128x128xf32>, vector<32x128xf32>, vector<128x32xf32> -> vector<128x32xf32>
    %cst_42 = arith.constant dense<0xFF800000> : vector<128xf32>
    %72 = vector.multi_reduction <maximumf>, %71, %cst_42 [1] : vector<128x32xf32> to vector<128xf32>
    %73 = vector.shape_cast %72 : vector<128xf32> to vector<128x1xf32>
    %74 = vector.broadcast %73 : vector<128x1xf32> to vector<128x32xf32>
    %75 = arith.subf %71, %74 : vector<128x32xf32>
    %76 = math.exp %75 : vector<128x32xf32>
    %cst_43 = arith.constant dense<0.000000e+00> : vector<128x4xf32>
    %77 = tpu.matmul %76, %60, %cst_43 {dimension_numbers = #tpu.dot_dimension_numbers<[1], [0], [0], [1], [0, 0, 1, 1], [], []>} : vector<128x32xf32>, vector<32x4xf32>, vector<128x4xf32> -> vector<128x4xf32>
    %78 = tpu.reciprocal %77 {approx = true} : vector<128x4xf32> -> vector<128x4xf32>
    %cst_44 = arith.constant dense<0.000000e+00> : vector<128x128xf32>
    %79 = tpu.matmul %76, %70, %cst_44 {dimension_numbers = #tpu.dot_dimension_numbers<[1], [0], [0], [1], [0, 0, 1, 1], [], []>} : vector<128x32xf32>, vector<32x128xf32>, vector<128x128xf32> -> vector<128x128xf32>
    %cst_45 = arith.constant dense<0.000000e+00> : vector<128x128xf32>
    %80 = tpu.matmul %78, %61, %cst_45 {dimension_numbers = #tpu.dot_dimension_numbers<[1], [0], [0], [1], [0, 0, 1, 1], [], []>} : vector<128x4xf32>, vector<4x128xf32>, vector<128x128xf32> -> vector<128x128xf32>
    %81 = arith.mulf %79, %80 : vector<128x128xf32>
    %cst_46 = arith.constant dense<0.000000e+00> : vector<128x128xf32>
    %82 = tpu.matmul %81, %62, %cst_46 {dimension_numbers = #tpu.dot_dimension_numbers<[1], [0], [0], [1], [0, 0, 1, 1], [], []>} : vector<128x128xf32>, vector<128x128xf32>, vector<128x128xf32> -> vector<128x128xf32>
    %83 = vector.broadcast %63 : vector<1x128xf32> to vector<128x128xf32>
    %84 = arith.addf %82, %83 : vector<128x128xf32>
    %c0_47 = arith.constant 0 : index
    %c0_48 = arith.constant 0 : index
    %85 = vector.load %arg16[%c0_47, %c0_48] : memref<256x128xf32, #tpu.memory_space<vmem>>, vector<128x128xf32>
    tpu.vector_store %arg16[%c0_47, %c0_48], %84 {strides = array<i32>} : memref<256x128xf32, #tpu.memory_space<vmem>>, vector<128x128xf32>,
    %86 = vector.extract_strided_slice %58 {offsets = [128, 0], sizes = [128, 128], strides = [1, 1]} : vector<256x128xf32> to vector<128x128xf32>
    %87 = vector.extract_strided_slice %48 {offsets = [8, 0], sizes = [8, 128], strides = [1, 1]} : vector<16x128xf32> to vector<8x128xf32>
    %88 = vector.extract_strided_slice %53 {offsets = [8, 0], sizes = [8, 128], strides = [1, 1]} : vector<16x128xf32> to vector<8x128xf32>
    %89 = tpu.concatenate %87, %87, %87, %87 in 0 : vector<8x128xf32>, vector<8x128xf32>, vector<8x128xf32>, vector<8x128xf32> -> vector<32x128xf32>
    %90 = arith.mulf %89, %59 : vector<32x128xf32>
    %91 = tpu.concatenate %88, %88, %88, %88 in 0 : vector<8x128xf32>, vector<8x128xf32>, vector<8x128xf32>, vector<8x128xf32> -> vector<32x128xf32>
    %92 = arith.mulf %91, %59 : vector<32x128xf32>
    %cst_49 = arith.constant dense<0.000000e+00> : vector<128x32xf32>
    %93 = tpu.matmul %86, %90, %cst_49 {dimension_numbers = #tpu.dot_dimension_numbers<[1], [1], [0], [0], [0, 0, 1, 0], [], []>} : vector<128x128xf32>, vector<32x128xf32>, vector<128x32xf32> -> vector<128x32xf32>
    %cst_50 = arith.constant dense<0xFF800000> : vector<128xf32>
    %94 = vector.multi_reduction <maximumf>, %93, %cst_50 [1] : vector<128x32xf32> to vector<128xf32>
    %95 = vector.shape_cast %94 : vector<128xf32> to vector<128x1xf32>
    %96 = vector.broadcast %95 : vector<128x1xf32> to vector<128x32xf32>
    %97 = arith.subf %93, %96 : vector<128x32xf32>
    %98 = math.exp %97 : vector<128x32xf32>
    %cst_51 = arith.constant dense<0.000000e+00> : vector<128x4xf32>
    %99 = tpu.matmul %98, %60, %cst_51 {dimension_numbers = #tpu.dot_dimension_numbers<[1], [0], [0], [1], [0, 0, 1, 1], [], []>} : vector<128x32xf32>, vector<32x4xf32>, vector<128x4xf32> -> vector<128x4xf32>
    %100 = tpu.reciprocal %99 {approx = true} : vector<128x4xf32> -> vector<128x4xf32>
    %cst_52 = arith.constant dense<0.000000e+00> : vector<128x128xf32>
    %101 = tpu.matmul %98, %92, %cst_52 {dimension_numbers = #tpu.dot_dimension_numbers<[1], [0], [0], [1], [0, 0, 1, 1], [], []>} : vector<128x32xf32>, vector<32x128xf32>, vector<128x128xf32> -> vector<128x128xf32>
    %cst_53 = arith.constant dense<0.000000e+00> : vector<128x128xf32>
    %102 = tpu.matmul %100, %61, %cst_53 {dimension_numbers = #tpu.dot_dimension_numbers<[1], [0], [0], [1], [0, 0, 1, 1], [], []>} : vector<128x4xf32>, vector<4x128xf32>, vector<128x128xf32> -> vector<128x128xf32>
    %103 = arith.mulf %101, %102 : vector<128x128xf32>
    %cst_54 = arith.constant dense<0.000000e+00> : vector<128x128xf32>
    %104 = tpu.matmul %103, %62, %cst_54 {dimension_numbers = #tpu.dot_dimension_numbers<[1], [0], [0], [1], [0, 0, 1, 1], [], []>} : vector<128x128xf32>, vector<128x128xf32>, vector<128x128xf32> -> vector<128x128xf32>
    %105 = vector.broadcast %63 : vector<1x128xf32> to vector<128x128xf32>
    %106 = arith.addf %104, %105 : vector<128x128xf32>
    %c128 = arith.constant 128 : index
    %c0_55 = arith.constant 0 : index
    %107 = vector.load %arg16[%c128, %c0_55] : memref<256x128xf32, #tpu.memory_space<vmem>>, vector<128x128xf32>
    tpu.vector_store %arg16[%c128, %c0_55], %106 {strides = array<i32>} : memref<256x128xf32, #tpu.memory_space<vmem>>, vector<128x128xf32>,
    return
  }
  func.func @transform_0(%arg0: i32) -> (i32, i32) {
    %c0_i32 = arith.constant 0 : i32
    %c0_i32_0 = arith.constant 0 : i32
    return %arg0, %c0_i32 : i32, i32
  }
  func.func @transform_1(%arg0: i32) -> (i32, i32) {
    %c0_i32 = arith.constant 0 : i32
    %c0_i32_0 = arith.constant 0 : i32
    return %arg0, %c0_i32 : i32, i32
  }
  func.func @transform_2(%arg0: i32) -> (i32, i32) {
    %c0_i32 = arith.constant 0 : i32
    %c0_i32_0 = arith.constant 0 : i32
    %c0_i32_1 = arith.constant 0 : i32
    return %c0_i32, %c0_i32_0 : i32, i32
  }
  func.func @transform_3(%arg0: i32) -> (i32, i32) {
    %c0_i32 = arith.constant 0 : i32
    %c0_i32_0 = arith.constant 0 : i32
    %c0_i32_1 = arith.constant 0 : i32
    return %c0_i32, %c0_i32_0 : i32, i32
  }
  func.func @transform_4(%arg0: i32) -> (i32, i32) {
    %c0_i32 = arith.constant 0 : i32
    %c0_i32_0 = arith.constant 0 : i32
    %c0_i32_1 = arith.constant 0 : i32
    return %c0_i32, %c0_i32_0 : i32, i32
  }
  func.func @transform_5(%arg0: i32) -> (i32, i32) {
    %c0_i32 = arith.constant 0 : i32
    %c0_i32_0 = arith.constant 0 : i32
    %c0_i32_1 = arith.constant 0 : i32
    return %c0_i32, %c0_i32_0 : i32, i32
  }
  func.func @transform_6(%arg0: i32) -> (i32, i32) {
    %c0_i32 = arith.constant 0 : i32
    %c0_i32_0 = arith.constant 0 : i32
    %c0_i32_1 = arith.constant 0 : i32
    return %c0_i32, %c0_i32_0 : i32, i32
  }
  func.func @transform_7(%arg0: i32) -> (i32, i32) {
    %c0_i32 = arith.constant 0 : i32
    %c0_i32_0 = arith.constant 0 : i32
    %c0_i32_1 = arith.constant 0 : i32
    return %c0_i32, %c0_i32_0 : i32, i32
  }
  func.func @transform_8(%arg0: i32) -> (i32, i32) {
    %c0_i32 = arith.constant 0 : i32
    %c0_i32_0 = arith.constant 0 : i32
    %c0_i32_1 = arith.constant 0 : i32
    return %c0_i32, %c0_i32_0 : i32, i32
  }
  func.func @transform_9(%arg0: i32) -> (i32, i32) {
    %c0_i32 = arith.constant 0 : i32
    %c0_i32_0 = arith.constant 0 : i32
    %c0_i32_1 = arith.constant 0 : i32
    return %c0_i32, %c0_i32_0 : i32, i32
  }
  func.func @transform_10(%arg0: i32) -> (i32, i32) {
    %c0_i32 = arith.constant 0 : i32
    %c0_i32_0 = arith.constant 0 : i32
    %c0_i32_1 = arith.constant 0 : i32
    return %c0_i32, %c0_i32_0 : i32, i32
  }
  func.func @transform_11(%arg0: i32) -> (i32, i32) {
    %c0_i32 = arith.constant 0 : i32
    %c0_i32_0 = arith.constant 0 : i32
    %c0_i32_1 = arith.constant 0 : i32
    return %c0_i32, %c0_i32_0 : i32, i32
  }
  func.func @transform_12(%arg0: i32) -> (i32, i32) {
    %c0_i32 = arith.constant 0 : i32
    %c0_i32_0 = arith.constant 0 : i32
    %c0_i32_1 = arith.constant 0 : i32
    return %c0_i32, %c0_i32_0 : i32, i32
  }
  func.func @transform_13(%arg0: i32) -> (i32, i32) {
    %c0_i32 = arith.constant 0 : i32
    %c0_i32_0 = arith.constant 0 : i32
    %c0_i32_1 = arith.constant 0 : i32
    return %c0_i32, %c0_i32_0 : i32, i32
  }
  func.func @transform_14(%arg0: i32) -> (i32, i32) {
    %c0_i32 = arith.constant 0 : i32
    %c0_i32_0 = arith.constant 0 : i32
    %c0_i32_1 = arith.constant 0 : i32
    return %c0_i32, %c0_i32_0 : i32, i32
  }
  func.func @transform_15(%arg0: i32) -> (i32, i32) {
    %c0_i32 = arith.constant 0 : i32
    %c0_i32_0 = arith.constant 0 : i32
    return %arg0, %c0_i32 : i32, i32
  }
}

</mosaic_0001>

<bundles_post_ra>
// kernel: tpu_custom_call.1
= control target key start
LH: loop header
LB: loop body
LE: loop exit
PB: predicated region body
PF: predicated region fallthrough
CT: control target
= control target key end

     0   :  { %20 = vsyncpa [#allocation3], 0  ;;  %s5824_s0 = inlined_call_operand.hbm [shape: f32[256,128], index: 0, kind: input, shape index: {}]   ;;  %s5825_s1 = inlined_call_operand.vmem [shape: f32[16,256], index: 1, kind: input, shape index: {}]   ;;  %s5826_s2 = inlined_call_operand.hbm [shape: f32[256,128], index: 2, kind: input, shape index: {}]   ;;  %s5827_s3 = inlined_call_operand.vmem [shape: f32[1,128], index: 3, kind: input, shape index: {}]   ;;  %s5828_s4 = inlined_call_operand.hbm [shape: f32[1,128], index: 4, kind: input, shape index: {}]   ;;  %s5829_s5 = inlined_call_operand.hbm [shape: f32[1,128], index: 5, kind: input, shape index: {}]   ;;  %s5830_s6 = inlined_call_operand.hbm [shape: f32[128,128], index: 6, kind: input, shape index: {}]   ;;  %s5831_s7 = inlined_call_operand.hbm [shape: f32[1,128], index: 7, kind: input, shape index: {}]   ;;  %s5832_s8 = inlined_call_operand.hbm [shape: f32[128,128], index: 8, kind: input, shape index: {}]   ;;  %s5833_s9 = inlined_call_operand.hbm [shape: f32[1,128], index: 9, kind: input, shape index: {}]   ;;  %s5834_s10 = inlined_call_operand.hbm [shape: f32[128,128], index: 10, kind: input, shape index: {}]   ;;  %s5835_s11 = inlined_call_operand.vmem [shape: f32[1,128], index: 11, kind: input, shape index: {}]   ;;  %s5836_s12 = inlined_call_operand.vmem [shape: f32[32,128], index: 12, kind: input, shape index: {}]   ;;  %s5837_s13 = inlined_call_operand.vmem [shape: f32[32,4], index: 13, kind: input, shape index: {}]   ;;  %s5838_s14 = inlined_call_operand.vmem [shape: f32[4,128], index: 14, kind: input, shape index: {}]   ;;  %s5839_s15 = inlined_call_operand.hbm [shape: f32[256,128], index: 15, kind: output, shape index: {}]  }
   0x1   :  { %21 = vsyncpa [#allocation6], 0 }
   0x2   :  { %22 = vsyncpa [#allocation9], 0 }
   0x3   :  { %23 = vsyncpa [#allocation12], 0 }
   0x4   :  { %24 = vsyncpa [#allocation15], 0 }
   0x5   :  { %25 = vsyncpa [#allocation4], 0  ;;  %s4614_s18 = smov [#allocation5]   ;;  %s4615_s20 = smov [#allocation8]  }
   0x6   :  { %s45_s19 = sshll.u32 %s4614_s18, 4  ;;  %s70_s21 = sshll.u32 %s4615_s20, 4  ;;  %s46_s19 = int_to_ptr.vmem [resolvable:$true] %s45_s19  ;;  %s4706_s21 = int_to_ptr.vmem [resolvable:$true] %s70_s21 }
   0x7   :  { %s4382_s24 = scalar_lea.hbm %s5826_s2, 4096 }
   0x8   :  { %p4383_p0 = scmp.ne.s32.totalorder %s5826_s2, %s4382_s24  ;;  %p4386_p1 = scmp.lt.u32.totalorder %s4382_s24, %s5826_s2 }
   0xa   :  { %p4388_p2 = pnand %p4386_p1, %p4383_p0 }
   0xc   :  { %4391 = shalt.err (!%p4388_p2)
}
   0xd   :  { %s4392_s29 = scalar_lea.vmem %s46_s19, 4096  ;;  %p4397_p4 = scmp.lt.s32.totalorder %s46_s19, %s46_s19 }
   0xe   :  { %p4393_p3 = scmp.ne.s32.totalorder %s46_s19, %s4392_s29  ;;  %p4398_p5 = scmp.lt.s32.totalorder %s4392_s29, %s4392_s29 }
  0x10   :  { %p4399_p6 = por %p4398_p5, %p4397_p4 }
  0x12   :  { %p4400_p7 = pnand %p4399_p6, %p4393_p3 }
  0x14   :  { %4403 = shalt.err (!%p4400_p7)
}
  0x15   :  { %s4616_s30 = smov 128   ;;  %s4617_s16 = smov 8  }
  0x16   :  { %51 = dma.hbm_to_vmem [thread:$0]  %s5826_s2, 4096, %s46_s19, [#allocation6], %s4616_s30, %s4616_s30, %s4617_s16  }
  0x17   :  { %s4404_s23 = scalar_lea.hbm %s5829_s5, 16 }
  0x18   :  { %p4405_p8 = scmp.ne.s32.totalorder %s5829_s5, %s4404_s23  ;;  %p4408_p9 = scmp.lt.u32.totalorder %s4404_s23, %s5829_s5 }
  0x1a   :  { %p4410_p10 = pnand %p4408_p9, %p4405_p8 }
  0x1c   :  { %4413 = shalt.err (!%p4410_p10)
}
  0x1d   :  { %s4414_s28 = scalar_lea.vmem %s4706_s21, 16  ;;  %s4418_s2 = scalar_lea.vmem %s4706_s21, 32 }
  0x1e   :  { %p4415_p11 = scmp.ne.s32.totalorder %s4706_s21, %s4414_s28  ;;  %p4419_p12 = scmp.lt.s32.totalorder %s4706_s21, %s4706_s21 }
  0x1f   :  { %p4420_p13 = scmp.lt.s32.totalorder %s4418_s2, %s4414_s28 }
  0x21   :  { %p4421_p0 = por %p4420_p13, %p4419_p12 }
  0x23   :  { %p4422_p1 = pnand %p4421_p0, %p4415_p11 }
  0x25   :  { %4425 = shalt.err (!%p4422_p1)
}
  0x26   :  { %73 = dma.hbm_to_vmem [thread:$0]  %s5829_s5, 16, %s4706_s21, [#allocation9]  }
  0x27   :  { %s4618_s17 = smov [#allocation11]   ;;  %s4619_s20 = smov [#allocation14]  }
  0x28   :  { %s92_s18 = sshll.u32 %s4618_s17, 4  ;;  %s114_s22 = sshll.u32 %s4619_s20, 4  ;;  %s93_s18 = int_to_ptr.vmem [resolvable:$true] %s92_s18  ;;  %s115_s22 = int_to_ptr.vmem [resolvable:$true] %s114_s22 }
  0x29   :  { %s4426_s25 = scalar_lea.hbm %s5831_s7, 16 }
  0x2a   :  { %p4427_p2 = scmp.ne.s32.totalorder %s5831_s7, %s4426_s25  ;;  %p4430_p3 = scmp.lt.u32.totalorder %s4426_s25, %s5831_s7 }
  0x2c   :  { %p4432_p4 = pnand %p4430_p3, %p4427_p2 }
  0x2e   :  { %4435 = shalt.err (!%p4432_p4)
}
  0x2f   :  { %s4436_s5 = scalar_lea.vmem %s93_s18, 16  ;;  %s4440_s21 = scalar_lea.vmem %s93_s18, 32 }
  0x30   :  { %p4437_p5 = scmp.ne.s32.totalorder %s93_s18, %s4436_s5  ;;  %p4441_p6 = scmp.lt.s32.totalorder %s93_s18, %s93_s18 }
  0x31   :  { %p4442_p7 = scmp.lt.s32.totalorder %s4440_s21, %s4436_s5 }
  0x33   :  { %p4443_p8 = por %p4442_p7, %p4441_p6 }
  0x35   :  { %p4444_p9 = pnand %p4443_p8, %p4437_p5 }
  0x37   :  { %4447 = shalt.err (!%p4444_p9)
}
  0x38   :  { %95 = dma.hbm_to_vmem [thread:$0]  %s5831_s7, 16, %s93_s18, [#allocation12]  }
  0x39   :  { %s4448_s23 = scalar_lea.hbm %s5833_s9, 16 }
  0x3a   :  { %p4449_p10 = scmp.ne.s32.totalorder %s5833_s9, %s4448_s23  ;;  %p4452_p11 = scmp.lt.u32.totalorder %s4448_s23, %s5833_s9 }
  0x3c   :  { %p4454_p12 = pnand %p4452_p11, %p4449_p10 }
  0x3e   :  { %4457 = shalt.err (!%p4454_p12)
}
  0x3f   :  { %s4458_s28 = scalar_lea.vmem %s115_s22, 16  ;;  %s4462_s2 = scalar_lea.vmem %s115_s22, 32 }
  0x40   :  { %p4459_p13 = scmp.ne.s32.totalorder %s115_s22, %s4458_s28  ;;  %p4463_p0 = scmp.lt.s32.totalorder %s115_s22, %s115_s22 }
  0x41   :  { %p4464_p1 = scmp.lt.s32.totalorder %s4462_s2, %s4458_s28 }
  0x43   :  { %p4465_p2 = por %p4464_p1, %p4463_p0 }
  0x45   :  { %p4466_p3 = pnand %p4465_p2, %p4459_p13 }
  0x47   :  { %4469 = shalt.err (!%p4466_p3)
}
  0x48   :  { %117 = dma.hbm_to_vmem [thread:$0]  %s5833_s9, 16, %s115_s22, [#allocation15]  }
  0x49   :  { %s4620_s5 = smov [#allocation2]   ;;  %s4621_s19 = smov [#allocation7]  }
  0x4a   :  { %s31_s21 = sshll.u32 %s4620_s5, 4  ;;  %s60_s29 = sshll.u32 %s4621_s19, 4  ;;  %s32_s21 = int_to_ptr.vmem [resolvable:$true] %s31_s21  ;;  %s61_s29 = int_to_ptr.vmem [resolvable:$true] %s60_s29 }
  0x4b   :  { %s4470_s23 = scalar_lea.hbm %s5824_s0, 4096 }
  0x4c   :  { %p4471_p4 = scmp.ne.s32.totalorder %s5824_s0, %s4470_s23  ;;  %p4474_p5 = scmp.lt.u32.totalorder %s4470_s23, %s5824_s0 }
  0x4e   :  { %p4476_p6 = pnand %p4474_p5, %p4471_p4 }
  0x50   :  { %4479 = shalt.err (!%p4476_p6)
}
  0x51   :  { %s4480_s9 = scalar_lea.vmem %s32_s21, 4096  ;;  %p4485_p8 = scmp.lt.s32.totalorder %s32_s21, %s32_s21 }
  0x52   :  { %p4481_p7 = scmp.ne.s32.totalorder %s32_s21, %s4480_s9  ;;  %p4486_p9 = scmp.lt.s32.totalorder %s4480_s9, %s4480_s9 }
  0x54   :  { %p4487_p10 = por %p4486_p9, %p4485_p8 }
  0x56   :  { %p4488_p11 = pnand %p4487_p10, %p4481_p7 }
  0x58   :  { %4491 = shalt.err (!%p4488_p11)
}
  0x59   :  { %37 = dma.hbm_to_vmem [thread:$0]  %s5824_s0, 4096, %s32_s21, [#allocation3], %s4616_s30, %s4616_s30, %s4617_s16  }
  0x5a   :  { %s4492_s18 = scalar_lea.hbm %s5828_s4, 16 }
  0x5b   :  { %p4493_p12 = scmp.ne.s32.totalorder %s5828_s4, %s4492_s18  ;;  %p4496_p13 = scmp.lt.u32.totalorder %s4492_s18, %s5828_s4 }
  0x5d   :  { %p4498_p0 = pnand %p4496_p13, %p4493_p12 }
  0x5f   :  { %4501 = shalt.err (!%p4498_p0)
}
  0x60   :  { %s4502_s23 = scalar_lea.vmem %s61_s29, 16  ;;  %s4506_s24 = scalar_lea.vmem %s61_s29, 32 }
  0x61   :  { %p4503_p1 = scmp.ne.s32.totalorder %s61_s29, %s4502_s23  ;;  %p4507_p2 = scmp.lt.s32.totalorder %s61_s29, %s61_s29 }
  0x62   :  { %p4508_p3 = scmp.lt.s32.totalorder %s4506_s24, %s4502_s23 }
  0x64   :  { %p4509_p4 = por %p4508_p3, %p4507_p2 }
  0x66   :  { %p4510_p5 = pnand %p4509_p4, %p4503_p1 }
  0x68   :  { %4513 = shalt.err (!%p4510_p5)
}
  0x69   :  { %63 = dma.hbm_to_vmem [thread:$0]  %s5828_s4, 16, %s61_s29, [#allocation6]  }
  0x6a   :  { %s4622_s25 = smov [#allocation10]   ;;  %s4623_s27 = smov [#allocation13]  }
  0x6b   :  { %s79_s26 = sshll.u32 %s4622_s25, 4  ;;  %s101_s9 = sshll.u32 %s4623_s27, 4  ;;  %s80_s26 = int_to_ptr.vmem [resolvable:$true] %s79_s26  ;;  %s4792_s9 = int_to_ptr.vmem [resolvable:$true] %s101_s9 }
  0x6c   :  { %s4514_s2 = scalar_lea.hbm %s5830_s6, 2048 }
  0x6d   :  { %p4515_p6 = scmp.ne.s32.totalorder %s5830_s6, %s4514_s2  ;;  %p4518_p7 = scmp.lt.u32.totalorder %s4514_s2, %s5830_s6 }
  0x6f   :  { %p4520_p8 = pnand %p4518_p7, %p4515_p6 }
  0x71   :  { %4523 = shalt.err (!%p4520_p8)
}
  0x72   :  { %s4524_s4 = scalar_lea.vmem %s80_s26, 2048  ;;  %p4529_p10 = scmp.lt.s32.totalorder %s80_s26, %s80_s26 }
  0x73   :  { %p4525_p9 = scmp.ne.s32.totalorder %s80_s26, %s4524_s4  ;;  %p4530_p11 = scmp.lt.s32.totalorder %s4524_s4, %s4524_s4 }
  0x75   :  { %p4531_p12 = por %p4530_p11, %p4529_p10 }
  0x77   :  { %p4532_p13 = pnand %p4531_p12, %p4525_p9 }
  0x79   :  { %4535 = shalt.err (!%p4532_p13)
}
  0x7a   :  { %85 = dma.hbm_to_vmem [thread:$0]  %s5830_s6, 2048, %s80_s26, [#allocation9], %s4616_s30, %s4616_s30, %s4617_s16  }
  0x7b   :  { %s4536_s24 = scalar_lea.hbm %s5832_s8, 2048 }
  0x7c   :  { %p4537_p0 = scmp.ne.s32.totalorder %s5832_s8, %s4536_s24  ;;  %p4540_p1 = scmp.lt.u32.totalorder %s4536_s24, %s5832_s8 }
  0x7e   :  { %p4542_p2 = pnand %p4540_p1, %p4537_p0 }
  0x80   :  { %4545 = shalt.err (!%p4542_p2)
}
  0x81   :  { %s4546_s22 = scalar_lea.vmem %s4792_s9, 2048  ;;  %p4551_p4 = scmp.lt.s32.totalorder %s4792_s9, %s4792_s9 }
  0x82   :  { %p4547_p3 = scmp.ne.s32.totalorder %s4792_s9, %s4546_s22  ;;  %p4552_p5 = scmp.lt.s32.totalorder %s4546_s22, %s4546_s22 }
  0x84   :  { %p4553_p6 = por %p4552_p5, %p4551_p4 }
  0x86   :  { %p4554_p7 = pnand %p4553_p6, %p4547_p3 }
  0x88   :  { %4557 = shalt.err (!%p4554_p7)
}
  0x89   :  { %107 = dma.hbm_to_vmem [thread:$0]  %s5832_s8, 2048, %s4792_s9, [#allocation12], %s4616_s30, %s4616_s30, %s4617_s16  }
  0x8a   :  { %s4624_s28 = smov [#allocation16]   ;;  %s4558_s5 = scalar_lea.hbm %s5834_s10, 2048 }
  0x8b   :  { %s123_s2 = sshll.u32 %s4624_s28, 4  ;;  %p4559_p8 = scmp.ne.s32.totalorder %s5834_s10, %s4558_s5  ;;  %s124_s2 = int_to_ptr.vmem [resolvable:$true] %s123_s2 }
  0x8c   :  { %p4562_p9 = scmp.lt.u32.totalorder %s4558_s5, %s5834_s10 }
  0x8e   :  { %p4564_p10 = pnand %p4562_p9, %p4559_p8 }
  0x90   :  { %4567 = shalt.err (!%p4564_p10)
}
  0x91   :  { %s4568_s20 = scalar_lea.vmem %s124_s2, 2048  ;;  %p4573_p12 = scmp.lt.s32.totalorder %s124_s2, %s124_s2 }
  0x92   :  { %p4569_p11 = scmp.ne.s32.totalorder %s124_s2, %s4568_s20  ;;  %p4574_p13 = scmp.lt.s32.totalorder %s4568_s20, %s4568_s20 }
  0x94   :  { %p4575_p0 = por %p4574_p13, %p4573_p12 }
  0x96   :  { %p4576_p1 = pnand %p4575_p0, %p4569_p11 }
  0x98   :  { %4579 = shalt.err (!%p4576_p1)
}
  0x99   :  { %129 = dma.hbm_to_vmem [thread:$0]  %s5834_s10, 2048, %s124_s2, [#allocation15], %s4616_s30, %s4616_s30, %s4617_s16  }
  0x9a   :  { %4602 = dma.done.wait [#allocation3], 4096  }
  0x9b   :  { %4603 = vsyncadd [#allocation3], 4294963200 }
  0x9c   :  { %4604 = dma.done.wait [#allocation6], 4112  }
  0x9d   :  { %4605 = vsyncadd [#allocation6], 4294963184 }
  0x9e   :  { %4606 = dma.done.wait [#allocation9], 2064  }
  0x9f   :  { %4607 = vsyncadd [#allocation9], 4294965232 }
  0xa0   :  { %4608 = dma.done.wait [#allocation12], 2064  }
  0xa1   :  { %4609 = vsyncadd [#allocation12], 4294965232 }
  0xa2   :  { %4610 = dma.done.wait [#allocation15], 2064  }
  0xa3   :  { %4611 = vsyncadd [#allocation15], 4294965232  ;;  %v4844_v0 = vld [vmem:[#allocation2] sm:$0xff]  ;;  %v571_v2 = vld [vmem:[#allocation5 + $0x88] sm:$0xff]  ;;  %vm1733_vm0 = vcmask 1043456   ;;  %vm1233_vm1 = vcmask 261120  }
  0xa4   :  { %v570_v1 = vld [vmem:[#allocation5 + $0x80] sm:$0xff]  ;;  %201 = vadd.xlane.f32.xlu0 %v4844_v0  ;;  %v555_v5 = vld [vmem:[#allocation5 + $0x8] sm:$0xff]  ;;  %v4847_v6 = vld [vmem:[#allocation2 + $0x10] sm:$0xff]  ;;  %vm1684_vm2 = vcmask 31744  }
  0xa5   :  { %v3956_v3 = vpack.c.bf16 %v571_v2, %v570_v1  ;;  %v554_v4 = vld [vmem:[#allocation5] sm:$0xff]  ;;  %205 = vadd.xlane.f32.xlu1 %v4847_v6  ;;  %v4850_v8 = vld [vmem:[#allocation2 + $0x8] sm:$0xff]  ;;  %v572_v9 = vld [vmem:[#allocation5 + $0x90] sm:$0xff] }
  0xa6   :  { %v3958_v7 = vpack.c.bf16 %v555_v5, %v554_v4  ;;  %v573_v10 = vld [vmem:[#allocation5 + $0x98] sm:$0xff]  ;;  %v556_v12 = vld [vmem:[#allocation5 + $0x10] sm:$0xff]  ;;  %v574_v16 = vld [vmem:[#allocation5 + $0xa0] sm:$0xff] }
  0xa7   :  { %3957 = vmatprep.subr.bf16.mxu0 %v3956_v3  ;;  %v3960_v11 = vpack.c.bf16 %v573_v10, %v572_v9  ;;  %v557_v13 = vld [vmem:[#allocation5 + $0x18] sm:$0xff]  ;;  %v575_v17 = vld [vmem:[#allocation5 + $0xa8] sm:$0xff]  ;;  %v558_v19 = vld [vmem:[#allocation5 + $0x20] sm:$0xff] }
  0xa8   :  { %v4852_v14 = vld [vmem:[#allocation2 + $0x18] sm:$0xff]  ;;  %3959 = vmatpush3.bf16.msra.mxu0 %v3958_v7  ;;  %v3962_v15 = vpack.c.bf16 %v557_v13, %v556_v12  ;;  %203 = vadd.xlane.f32.xlu0 %v4850_v8  ;;  %v3964_v18 = vpack.c.bf16 %v575_v17, %v574_v16  ;;  %v559_v20 = vld [vmem:[#allocation5 + $0x28] sm:$0xff]  ;;  %v4856_v21 = vld [vmem:[#allocation2 + $0x20] sm:$0xff] }
  0xa9   :  { %3961 = vmatprep.subr.bf16.mxu0 %v3960_v11  ;;  %207 = vadd.xlane.f32.xlu1 %v4852_v14  ;;  %v576_v22 = vld [vmem:[#allocation5 + $0xb0] sm:$0xff]  ;;  %v577_v23 = vld [vmem:[#allocation5 + $0xb8] sm:$0xff]  ;;  %v4858_v24 = vld [vmem:[#allocation2 + $0x28] sm:$0xff]  ;;  %v3966_v25 = vpack.c.bf16 %v559_v20, %v558_v19 }
  0xaa   :  { %v3968_v26 = vpack.c.bf16 %v577_v23, %v576_v22  ;;  %v560_v27 = vld [vmem:[#allocation5 + $0x30] sm:$0xff]  ;;  %v561_v28 = vld [vmem:[#allocation5 + $0x38] sm:$0xff]  ;;  %v578_v30 = vld [vmem:[#allocation5 + $0xc0] sm:$0xff] }
  0xab   :  { %v4862_v29 = vld [vmem:[#allocation2 + $0x30] sm:$0xff]  ;;  %v579_v31 = vld [vmem:[#allocation5 + $0xc8] sm:$0xff]  ;;  %v4864_v32 = vld [vmem:[#allocation2 + $0x38] sm:$0xff]  ;;  %v3970_v33 = vpack.c.bf16 %v561_v28, %v560_v27 }
  0xac   :  { %3963 = vmatpush3.bf16.msra.mxu0 %v3962_v15  ;;  %209 = vadd.xlane.f32.xlu0 %v4856_v21  ;;  %v3972_v34 = vpack.c.bf16 %v579_v31, %v578_v30  ;;  %v562_v35 = vld [vmem:[#allocation5 + $0x40] sm:$0xff]  ;;  %v563_v36 = vld [vmem:[#allocation5 + $0x48] sm:$0xff]  ;;  %v580_v38 = vld [vmem:[#allocation5 + $0xd0] sm:$0xff] }
  0xad   :  { %3965 = vmatprep.subr.bf16.mxu0 %v3964_v18  ;;  %211 = vadd.xlane.f32.xlu1 %v4858_v24  ;;  %v4868_v37 = vld [vmem:[#allocation2 + $0x40] sm:$0xff]  ;;  %v581_v39 = vld [vmem:[#allocation5 + $0xd8] sm:$0xff]  ;;  %v4870_v40 = vld [vmem:[#allocation2 + $0x48] sm:$0xff]  ;;  %v3974_v41 = vpack.c.bf16 %v563_v36, %v562_v35 }
  0xae   :  { %v198_v42 = vld [vmem:[%s5825_s1 + $0x8] sm:$0xff]  ;;  %v3976_v43 = vpack.c.bf16 %v581_v39, %v580_v38  ;;  %v564_v44 = vld [vmem:[#allocation5 + $0x50] sm:$0xff]  ;;  %v565_v45 = vld [vmem:[#allocation5 + $0x58] sm:$0xff] }
  0xaf   :  { %v4877_v46 = vld [vmem:[#allocation2 + $0x50] sm:$0xff]  ;;  %v582_v47 = vld [vmem:[#allocation5 + $0xe0] sm:$0xff]  ;;  %v583_v48 = vld [vmem:[#allocation5 + $0xe8] sm:$0xff]  ;;  %657 = vmatprep.mubr.f32.mxu0 %v198_v42  ;;  %v3978_v50 = vpack.c.bf16 %v565_v45, %v564_v44 }
  0xb0   :  { %3967 = vmatpush3.bf16.msra.mxu0 %v3966_v25  ;;  %213 = vadd.xlane.f32.xlu0 %v4862_v29  ;;  %v4879_v49 = vld [vmem:[#allocation2 + $0x58] sm:$0xff]  ;;  %v3980_v51 = vpack.c.bf16 %v583_v48, %v582_v47  ;;  %v566_v52 = vld [vmem:[#allocation5 + $0x60] sm:$0xff]  ;;  %v567_v53 = vld [vmem:[#allocation5 + $0x68] sm:$0xff] }
  0xb1   :  { %3969 = vmatprep.subr.bf16.mxu0 %v3968_v26  ;;  %215 = vadd.xlane.f32.xlu1 %v4864_v32  ;;  %v4883_v54 = vld [vmem:[#allocation2 + $0x60] sm:$0xff]  ;;  %v584_v55 = vld [vmem:[#allocation5 + $0xf0] sm:$0xff]  ;;  %v585_v56 = vld [vmem:[#allocation5 + $0xf8] sm:$0xff]  ;;  %v3982_v58 = vpack.c.bf16 %v567_v53, %v566_v52 }
  0xb2   :  { %v4885_v57 = vld [vmem:[#allocation2 + $0x68] sm:$0xff]  ;;  %v3984_v59 = vpack.c.bf16 %v585_v56, %v584_v55  ;;  %v568_v60 = vld [vmem:[#allocation5 + $0x70] sm:$0xff]  ;;  %v569_v61 = vld [vmem:[#allocation5 + $0x78] sm:$0xff] }
  0xb3   :  { %v4889_v62 = vld [vmem:[#allocation2 + $0x70] sm:$0xff]  ;;  %v4891_v63 = vld [vmem:[#allocation2 + $0x78] sm:$0xff]  ;;  %v3986_v1 = vpack.c.bf16 %v569_v61, %v568_v60  ;;  %v197_v2 = vld [vmem:[%s5825_s1] sm:$0xff] }
  0xb4   :  { %3971 = vmatpush3.bf16.msra.mxu0 %v3970_v33  ;;  %217 = vadd.xlane.f32.xlu0 %v4868_v37  ;;  %v200_v3 = vld [vmem:[%s5825_s1 + $0x18] sm:$0xff]  ;;  %v199_v4 = vld [vmem:[%s5825_s1 + $0x10] sm:$0xff]  ;;  %v806_v5 = vld [vmem:[#allocation10] sm:$0xff] }
  0xb5   :  { %3973 = vmatprep.subr.bf16.mxu0 %v3972_v34  ;;  %219 = vadd.xlane.f32.xlu1 %v4870_v40  ;;  %v807_v7 = vld [vmem:[#allocation10 + $0x8] sm:$0xff]  ;;  %v808_v9 = vld [vmem:[#allocation10 + $0x10] sm:$0xff]  ;;  %v809_v11 = vld [vmem:[#allocation10 + $0x18] sm:$0xff] }
  0xb6   :  { %v4020_v10 = vpack.c.bf16 %v807_v7, %v806_v5  ;;  %v4024_v12 = vpack.c.bf16 %v809_v11, %v808_v9  ;;  %v810_v13 = vld [vmem:[#allocation10 + $0x20] sm:$0xff]  ;;  %v811_v15 = vld [vmem:[#allocation10 + $0x28] sm:$0xff]  ;;  %v812_v56 = vld [vmem:[#allocation10 + $0x30] sm:$0xff] }
  0xb7   :  { %v4028_v16 = vpack.c.bf16 %v811_v15, %v810_v13  ;;  %v814_v7 = vld [vmem:[#allocation10 + $0x40] sm:$0xff]  ;;  %v815_v9 = vld [vmem:[#allocation10 + $0x48] sm:$0xff] }
  0xb8   :  { %3975 = vmatpush3.bf16.msra.mxu0 %v3974_v41  ;;  %221 = vadd.xlane.f32.xlu0 %v4877_v46  ;;  %v4036_v13 = vpack.c.bf16 %v815_v9, %v814_v7 }
  0xb9   :  { %3977 = vmatprep.subr.bf16.mxu0 %v3976_v43  ;;  %223 = vadd.xlane.f32.xlu1 %v4879_v49 }
  0xbc   :  { %3979 = vmatpush3.bf16.msra.mxu0 %v3978_v50  ;;  %225 = vadd.xlane.f32.xlu0 %v4883_v54 }
  0xbd   :  { %3981 = vmatprep.subr.bf16.mxu0 %v3980_v51  ;;  %227 = vadd.xlane.f32.xlu1 %v4885_v57 }
  0xc0   :  { %3983 = vmatpush3.bf16.msra.mxu0 %v3982_v58  ;;  %229 = vadd.xlane.f32.xlu0 %v4889_v62  ;;  %v813_v58 = vld [vmem:[#allocation10 + $0x38] sm:$0xff] }
  0xc1   :  { %3985 = vmatprep.subr.bf16.mxu0 %v3984_v59  ;;  %231 = vadd.xlane.f32.xlu1 %v4891_v63  ;;  %v4032_v60 = vpack.c.bf16 %v813_v58, %v812_v56 }
  0xc4   :  { %3987 = vmatpush3.bf16.msra.mxu0 %v3986_v1 }
  0xc5   :  { %4021 = vmatprep.subr.bf16.mxu0 %v4020_v10 }
  0xc7   :  { %658 = vmatmul.mubr.f32.vlgmr.msra.gmra.mrb[0].mxu0 %v197_v2 }
  0xc8   :  { %662 = vmatprep.mubr.f32.mxu0 %v200_v3  ;;  %4023 = vmatpush3.bf16.msra.mxu0 %v4020_v10 }
  0xc9   :  { %4025 = vmatprep.subr.bf16.mxu0 %v4024_v12 }
  0xcb   :  { %663 = vmatmul.mubr.f32.gmra.mrb[2].mxu0 %v199_v4 }
  0xcc   :  { %4027 = vmatpush3.bf16.msra.mxu0 %v4024_v12 }
  0xcd   :  { %4029 = vmatprep.subr.bf16.mxu0 %v4028_v16 }
  0xd0   :  { %4031 = vmatpush3.bf16.msra.mxu0 %v4028_v16 }
  0xd1   :  { %4033 = vmatprep.subr.bf16.mxu0 %v4032_v60 }
  0xd4   :  { %4035 = vmatpush3.bf16.msra.mxu0 %v4032_v60 }
  0xd5   :  { %4037 = vmatprep.subr.bf16.mxu0 %v4036_v13 }
  0xd8   :  { %4039 = vmatpush3.bf16.msra.mxu0 %v4036_v13 }
 0x131   :  { %v202_v17 = vpop.xlane.xlu0 %201 }
 0x132   :  { %v266_v18 = vmul.f32 0.0078125, %v202_v17  ;;  %v206_v19 = vpop.xlane.xlu1 %205 }
 0x133   :  { %v268_v20 = vmul.f32 0.0078125, %v206_v19  ;;  %v817_v19 = vld [vmem:[#allocation10 + $0x58] sm:$0xff] }
 0x134   :  { %v4905_v22 = vsub.f32 %v4844_v0, %v266_v18  ;;  %v816_v18 = vld [vmem:[#allocation10 + $0x50] sm:$0xff] }
 0x135   :  { %v204_v23 = vpop.xlane.xlu0 %203  ;;  %v4908_v25 = vsub.f32 %v4847_v6, %v268_v20 }
 0x136   :  { %v267_v26 = vmul.f32 0.0078125, %v204_v23  ;;  %v330_v27 = vmul.f32 %v4905_v22, %v4905_v22  ;;  %v208_v28 = vpop.xlane.xlu1 %207 }
 0x137   :  { %v269_v30 = vmul.f32 0.0078125, %v208_v28  ;;  %v332_v33 = vmul.f32 %v4908_v25, %v4908_v25 }
 0x138   :  { %v4913_v31 = vsub.f32 %v4850_v8, %v267_v26  ;;  %362 = vadd.xlane.f32.xlu0 %v330_v27 }
 0x139   :  { %v4918_v0 = vsub.f32 %v4852_v14, %v269_v30  ;;  %v210_v34 = vpop.xlane.xlu0 %209 }
 0x13a   :  { %v270_v35 = vmul.f32 0.0078125, %v210_v34  ;;  %v331_v6 = vmul.f32 %v4913_v31, %v4913_v31  ;;  %v212_v36 = vpop.xlane.xlu1 %211  ;;  %v819_v34 = vld [vmem:[#allocation10 + $0x68] sm:$0xff] }
 0x13b   :  { %v271_v38 = vmul.f32 0.0078125, %v212_v36  ;;  %v333_v8 = vmul.f32 %v4918_v0, %v4918_v0  ;;  %v820_v36 = vld [vmem:[#allocation10 + $0x70] sm:$0xff] }
 0x13c   :  { %v4923_v39 = vsub.f32 %v4856_v21, %v270_v35  ;;  %366 = vadd.xlane.f32.xlu0 %v332_v33  ;;  %364 = vadd.xlane.f32.xlu1 %v331_v6  ;;  %v818_v33 = vld [vmem:[#allocation10 + $0x60] sm:$0xff] }
 0x13d   :  { %v4928_v41 = vsub.f32 %v4858_v24, %v271_v38  ;;  %v214_v14 = vpop.xlane.xlu0 %213  ;;  %v4044_v6 = vpack.c.bf16 %v819_v34, %v818_v33  ;;  %v821_v38 = vld [vmem:[#allocation10 + $0x78] sm:$0xff] }
 0x13e   :  { %v272_v42 = vmul.f32 0.0078125, %v214_v14  ;;  %v334_v43 = vmul.f32 %v4923_v39, %v4923_v39  ;;  %v216_v44 = vpop.xlane.xlu1 %215 }
 0x13f   :  { %v273_v45 = vmul.f32 0.0078125, %v216_v44  ;;  %v335_v21 = vmul.f32 %v4928_v41, %v4928_v41 }
 0x140   :  { %v4933_v47 = vsub.f32 %v4862_v29, %v272_v42  ;;  %368 = vadd.xlane.f32.xlu1 %v333_v8  ;;  %370 = vadd.xlane.f32.xlu0 %v334_v43  ;;  %v4048_v8 = vpack.c.bf16 %v821_v38, %v820_v36  ;;  %v3059_v42 = vld [vmem:[%s5827_s3] ss:$0 sm:$0xff] }
 0x141   :  { %v4938_v48 = vsub.f32 %v4864_v32, %v273_v45  ;;  %v218_v24 = vpop.xlane.xlu0 %217 }
 0x142   :  { %v274_v50 = vmul.f32 0.0078125, %v218_v24  ;;  %v336_v51 = vmul.f32 %v4933_v47, %v4933_v47  ;;  %v220_v52 = vpop.xlane.xlu1 %219 }
 0x143   :  { %v275_v53 = vmul.f32 0.0078125, %v220_v52  ;;  %v337_v29 = vmul.f32 %v4938_v48, %v4938_v48 }
 0x144   :  { %v4943_v55 = vsub.f32 %v4868_v37, %v274_v50  ;;  %372 = vadd.xlane.f32.xlu1 %v335_v21  ;;  %374 = vadd.xlane.f32.xlu0 %v336_v51 }
 0x145   :  { %v4948_v32 = vsub.f32 %v4870_v40, %v275_v53  ;;  %v222_v59 = vpop.xlane.xlu0 %221 }
 0x146   :  { %v276_v61 = vmul.f32 0.0078125, %v222_v59  ;;  %v338_v1 = vmul.f32 %v4943_v55, %v4943_v55  ;;  %v224_v2 = vpop.xlane.xlu1 %223 }
 0x147   :  { %v277_v3 = vmul.f32 0.0078125, %v224_v2  ;;  %v339_v4 = vmul.f32 %v4948_v32, %v4948_v32 }
 0x148   :  { %v4953_v37 = vsub.f32 %v4877_v46, %v276_v61  ;;  %376 = vadd.xlane.f32.xlu1 %v337_v29  ;;  %378 = vadd.xlane.f32.xlu0 %v338_v1 }
 0x149   :  { %v4958_v40 = vsub.f32 %v4879_v49, %v277_v3  ;;  %v226_v5 = vpop.xlane.xlu0 %225 }
 0x14a   :  { %v278_v10 = vmul.f32 0.0078125, %v226_v5  ;;  %v340_v11 = vmul.f32 %v4953_v37, %v4953_v37  ;;  %v228_v12 = vpop.xlane.xlu1 %227 }
 0x14b   :  { %v279_v46 = vmul.f32 0.0078125, %v228_v12  ;;  %v341_v49 = vmul.f32 %v4958_v40, %v4958_v40 }
 0x14c   :  { %v4963_v15 = vsub.f32 %v4883_v54, %v278_v10  ;;  %380 = vadd.xlane.f32.xlu1 %v339_v4  ;;  %382 = vadd.xlane.f32.xlu0 %v340_v11  ;;  %v4040_v54 = vpack.c.bf16 %v817_v19, %v816_v18 }
 0x14d   :  { %v4968_v16 = vsub.f32 %v4885_v57, %v279_v46  ;;  %v230_v17 = vpop.xlane.xlu0 %229 }
 0x14e   :  { %v280_v20 = vmul.f32 0.0078125, %v230_v17  ;;  %v342_v23 = vmul.f32 %v4963_v15, %v4963_v15  ;;  %v232_v26 = vpop.xlane.xlu1 %231  ;;  %4041 = vmatprep.subr.bf16.mxu0 %v4040_v54 }
 0x14f   :  { %v281_v27 = vmul.f32 0.0078125, %v232_v26  ;;  %v343_v57 = vmul.f32 %v4968_v16, %v4968_v16  ;;  %4043 = vmatpush3.bf16.msra.mxu0 %v4040_v54 }
 0x150   :  { %v4973_v28 = vsub.f32 %v4889_v62, %v280_v20  ;;  %384 = vadd.xlane.f32.xlu1 %v341_v49  ;;  %386 = vadd.xlane.f32.xlu0 %v342_v23 }
 0x151   :  { %v4978_v30 = vsub.f32 %v4891_v63, %v281_v27  ;;  %4045 = vmatprep.subr.bf16.mxu0 %v4044_v6 }
 0x152   :  { %v344_v35 = vmul.f32 %v4973_v28, %v4973_v28 }
 0x153   :  { %v345_v62 = vmul.f32 %v4978_v30, %v4978_v30  ;;  %4047 = vmatpush3.bf16.msra.mxu0 %v4044_v6 }
 0x154   :  { %388 = vadd.xlane.f32.xlu1 %v343_v57  ;;  %390 = vadd.xlane.f32.xlu0 %v344_v35 }
 0x155   :  { %4049 = vmatprep.subr.bf16.mxu0 %v4048_v8 }
 0x157   :  { %4051 = vmatpush3.bf16.msra.mxu0 %v4048_v8 }
 0x158   :  { %392 = vadd.xlane.f32.xlu1 %v345_v62 }
 0x19a   :  { %v3195_v63 = vpop.f32.mrb[0].mxu0 }
 0x19b   :  { %v3196_v14 = vpop.f32.mrb[1].mxu0 }
 0x19c   :  { %v3197_v43 = vadd.f32 %v3196_v14, %v3195_v63 }
 0x19e   :  { %v3198_v44 = vpop.f32.mrb[2].mxu0  ;;  %v4987_v45 = vadd.f32 %v3197_v43, %v3059_v42 }
 0x19f   :  { %v3199_v21 = vpop.f32.mrb[3].mxu0 }
 0x1a0   :  { %v3200_v24 = vadd.f32 %v3199_v21, %v3198_v44  ;;  %668 = vadd.xlane.f32.xlu0 %v4987_v45 }
 0x1a2   :  { %v4990_v50 = vadd.f32 %v3200_v24, %v3059_v42 }
 0x1a4   :  { %670 = vadd.xlane.f32.xlu1 %v4990_v50 }
 0x1c5   :  { %v363_v51 = vpop.xlane.xlu0 %362 }
 0x1c6   :  { %v426_v52 = vmul.f32 0.0078125, %v363_v51 }
 0x1c8   :  { %v458_v53 = vadd.f32 1e-05, %v426_v52 }
 0x1c9   :  { %v365_v29 = vpop.xlane.xlu1 %364  ;;  %v367_v56 = vpop.xlane.xlu0 %366 }
 0x1ca   :  { %4180 = vrsqrt.f32 %v458_v53  ;;  %v427_v58 = vmul.f32 0.0078125, %v365_v29  ;;  %v428_v59 = vmul.f32 0.0078125, %v367_v56 }
 0x1cc   :  { %v459_v60 = vadd.f32 1e-05, %v427_v58  ;;  %v460_v61 = vadd.f32 1e-05, %v428_v59 }
 0x1cd   :  { %v369_v1 = vpop.xlane.xlu1 %368  ;;  %v371_v2 = vpop.xlane.xlu0 %370 }
 0x1ce   :  { %4182 = vrsqrt.f32 %v459_v60  ;;  %v429_v3 = vmul.f32 0.0078125, %v369_v1  ;;  %v430_v4 = vmul.f32 0.0078125, %v371_v2 }
 0x1cf   :  { %4184 = vrsqrt.f32 %v460_v61 }
 0x1d0   :  { %v461_v5 = vadd.f32 1e-05, %v429_v3  ;;  %v462_v7 = vadd.f32 1e-05, %v430_v4 }
 0x1d1   :  { %v373_v9 = vpop.xlane.xlu1 %372  ;;  %v375_v10 = vpop.xlane.xlu0 %374 }
 0x1d2   :  { %4186 = vrsqrt.f32 %v461_v5  ;;  %v431_v11 = vmul.f32 0.0078125, %v373_v9  ;;  %v432_v12 = vmul.f32 0.0078125, %v375_v10 }
 0x1d3   :  { %4188 = vrsqrt.f32 %v462_v7 }
 0x1d4   :  { %v4181_v13 = vpop.eup %4180  ;;  %v463_v46 = vadd.f32 1e-05, %v431_v11  ;;  %v464_v49 = vadd.f32 1e-05, %v432_v12 }
 0x1d5   :  { %v377_v17 = vpop.xlane.xlu1 %376  ;;  %v379_v18 = vpop.xlane.xlu0 %378  ;;  %v522_v19 = vmul.f32 %v4181_v13, %v4905_v22 }
 0x1d6   :  { %4190 = vrsqrt.f32 %v463_v46  ;;  %v433_v20 = vmul.f32 0.0078125, %v377_v17  ;;  %v434_v23 = vmul.f32 0.0078125, %v379_v18 }
 0x1d7   :  { %4192 = vrsqrt.f32 %v464_v49  ;;  %3552 = vmatprep.mubr.f32.mxu0 %v522_v19 }
 0x1d8   :  { %v4183_v26 = vpop.eup %4182  ;;  %v465_v54 = vadd.f32 1e-05, %v433_v20  ;;  %v466_v27 = vadd.f32 1e-05, %v434_v23 }
 0x1d9   :  { %v4185_v57 = vpop.eup %4184  ;;  %v381_v33 = vpop.xlane.xlu1 %380  ;;  %v523_v35 = vmul.f32 %v4183_v26, %v4913_v31  ;;  %v709_v26 = vld [vmem:[#allocation13 + $0x8] sm:$0xff] }
 0x1da   :  { %v383_v34 = vpop.xlane.xlu0 %382  ;;  %4194 = vrsqrt.f32 %v465_v54  ;;  %v435_v6 = vmul.f32 0.0078125, %v381_v33  ;;  %v524_v36 = vmul.f32 %v4185_v57, %v4908_v25  ;;  %v712_v33 = vld [vmem:[#allocation13 + $0x20] sm:$0xff] }
 0x1db   :  { %v436_v62 = vmul.f32 0.0078125, %v383_v34  ;;  %4196 = vrsqrt.f32 %v466_v27  ;;  %3553 = vmatmul.mubr.f32.vlgmr.msra.gmra.mrb[4].mxu0 %v523_v35  ;;  %v711_v27 = vld [vmem:[#allocation13 + $0x18] sm:$0xff]  ;;  %v713_v34 = vld [vmem:[#allocation13 + $0x28] sm:$0xff] }
 0x1dc   :  { %v4187_v22 = vpop.eup %4186  ;;  %v467_v38 = vadd.f32 1e-05, %v435_v6  ;;  %3555 = vmatprep.mubr.f32.mxu0 %v524_v36  ;;  %v3996_v35 = vpack.c.bf16 %v713_v34, %v712_v33  ;;  %v715_v6 = vld [vmem:[#allocation13 + $0x38] sm:$0xff]  ;;  %v716_v36 = vld [vmem:[#allocation13 + $0x40] sm:$0xff] }
 0x1dd   :  { %v468_v8 = vadd.f32 1e-05, %v436_v62  ;;  %v4189_v63 = vpop.eup %4188  ;;  %v385_v14 = vpop.xlane.xlu1 %384  ;;  %v525_v43 = vmul.f32 %v4187_v22, %v4918_v0  ;;  %v717_v22 = vld [vmem:[#allocation13 + $0x48] sm:$0xff] }
 0x1de   :  { %v387_v42 = vpop.xlane.xlu0 %386  ;;  %4198 = vrsqrt.f32 %v467_v38  ;;  %v437_v44 = vmul.f32 0.0078125, %v385_v14  ;;  %v526_v31 = vmul.f32 %v4189_v63, %v4923_v39  ;;  %v4004_v38 = vpack.c.bf16 %v717_v22, %v716_v36  ;;  %v719_v63 = vld [vmem:[#allocation13 + $0x58] sm:$0xff] }
 0x1df   :  { %v438_v21 = vmul.f32 0.0078125, %v387_v42  ;;  %4200 = vrsqrt.f32 %v468_v8  ;;  %3556 = vmatmul.mubr.f32.gmra.mrb[6].mxu0 %v525_v43  ;;  %v718_v8 = vld [vmem:[#allocation13 + $0x50] sm:$0xff]  ;;  %v720_v42 = vld [vmem:[#allocation13 + $0x60] sm:$0xff]  ;;  %v721_v43 = vld [vmem:[#allocation13 + $0x68] sm:$0xff] }
 0x1e0   :  { %v4191_v24 = vpop.eup %4190  ;;  %v469_v25 = vadd.f32 1e-05, %v437_v44  ;;  %3558 = vmatprep.mubr.f32.mxu0 %v526_v31  ;;  %v4008_v14 = vpack.c.bf16 %v719_v63, %v718_v8  ;;  %v4012_v44 = vpack.c.bf16 %v721_v43, %v720_v42  ;;  %v723_v31 = vld [vmem:[#allocation13 + $0x78] sm:$0xff] }
 0x1e1   :  { %v470_v51 = vadd.f32 1e-05, %v438_v21  ;;  %v4193_v52 = vpop.eup %4192  ;;  %v389_v53 = vpop.xlane.xlu1 %388  ;;  %v527_v56 = vmul.f32 %v4191_v24, %v4928_v41  ;;  %v722_v21 = vld [vmem:[#allocation13 + $0x70] sm:$0xff] }
 0x1e2   :  { %v391_v29 = vpop.xlane.xlu0 %390  ;;  %4202 = vrsqrt.f32 %v469_v25  ;;  %v439_v58 = vmul.f32 0.0078125, %v389_v53  ;;  %v528_v0 = vmul.f32 %v4193_v52, %v4933_v47  ;;  %v4016_v24 = vpack.c.bf16 %v723_v31, %v722_v21  ;;  %v1062_v25 = vld [vmem:[%s5838_s14] sm:$0xf] }
 0x1e3   :  { %v440_v59 = vmul.f32 0.0078125, %v391_v29  ;;  %4204 = vrsqrt.f32 %v470_v51  ;;  %3559 = vmatmul.mubr.f32.gmra.mrb[8].mxu0 %v527_v56  ;;  %3696 = vmatprep.subr.msk.mxu0 %vm1733_vm0, %v1062_v25 }
 0x1e4   :  { %v4195_v60 = vpop.eup %4194  ;;  %v471_v39 = vadd.f32 1e-05, %v439_v58  ;;  %3561 = vmatprep.mubr.f32.mxu0 %v528_v0  ;;  %3697 = vmatpush3.msk.msra.mxu0 %vm1733_vm0, %v1062_v25  ;;  %v1059_v25 = vld [vmem:[%s5837_s13 + $0x8] sm:$0xff] }
 0x1e5   :  { %v472_v61 = vadd.f32 1e-05, %v440_v59  ;;  %v4197_v1 = vpop.eup %4196  ;;  %v393_v2 = vpop.xlane.xlu1 %392  ;;  %v529_v3 = vmul.f32 %v4195_v60, %v4938_v48 }
 0x1e6   :  { %4206 = vrsqrt.f32 %v471_v39  ;;  %v441_v4 = vmul.f32 0.0078125, %v393_v2  ;;  %v530_v5 = vmul.f32 %v4197_v1, %v4943_v55 }
 0x1e7   :  { %4208 = vrsqrt.f32 %v472_v61  ;;  %3562 = vmatmul.mubr.f32.gmra.mrb[10].mxu0 %v529_v3 }
 0x1e8   :  { %v4199_v41 = vpop.eup %4198  ;;  %v473_v7 = vadd.f32 1e-05, %v441_v4  ;;  %3564 = vmatprep.mubr.f32.mxu0 %v530_v5 }
 0x1e9   :  { %v4201_v47 = vpop.eup %4200  ;;  %v531_v9 = vmul.f32 %v4199_v41, %v4948_v32 }
 0x1ea   :  { %4210 = vrsqrt.f32 %v473_v7  ;;  %v532_v10 = vmul.f32 %v4201_v47, %v4953_v37 }
 0x1eb   :  { %3565 = vmatmul.mubr.f32.gmra.mrb[12].mxu0 %v531_v9 }
 0x1ec   :  { %v4203_v11 = vpop.eup %4202  ;;  %3567 = vmatprep.mubr.f32.mxu0 %v532_v10 }
 0x1ed   :  { %v4205_v12 = vpop.eup %4204  ;;  %v533_v48 = vmul.f32 %v4203_v11, %v4958_v40 }
 0x1ee   :  { %v534_v13 = vmul.f32 %v4205_v12, %v4963_v15 }
 0x1ef   :  { %3568 = vmatmul.mubr.f32.gmra.mrb[14].mxu0 %v533_v48  ;;  %v3060_v48 = vld [vmem:[#allocation7] ss:$0 sm:$0xff] }
 0x1f0   :  { %v4207_v55 = vpop.eup %4206  ;;  %3570 = vmatprep.mubr.f32.mxu0 %v534_v13 }
 0x1f1   :  { %v4209_v46 = vpop.eup %4208  ;;  %v535_v49 = vmul.f32 %v4207_v55, %v4968_v16  ;;  %v3061_v55 = vld [vmem:[#allocation8] ss:$0 sm:$0xff] }
 0x1f2   :  { %v536_v17 = vmul.f32 %v4209_v46, %v4973_v28  ;;  %v708_v28 = vld [vmem:[#allocation13] sm:$0xff]  ;;  %v3063_v46 = vld [vmem:[#allocation11] ss:$0 sm:$0xff] }
 0x1f3   :  { %3571 = vmatmul.mubr.f32.gmra.mrb[16].mxu0 %v535_v49  ;;  %v3988_v54 = vpack.c.bf16 %v709_v26, %v708_v28 }
 0x1f4   :  { %v4211_v32 = vpop.eup %4210  ;;  %3573 = vmatprep.mubr.f32.mxu0 %v536_v17 }
 0x1f5   :  { %v537_v37 = vmul.f32 %v4211_v32, %v4978_v30  ;;  %3989 = vmatprep.subr.bf16.mxu1 %v3988_v54  ;;  %v5038_v32 = vld [vmem:[%s5836_s12] sm:$0xff] }
 0x1f6   :  { %3991 = vmatpush3.bf16.msra.mxu1 %v3988_v54 }
 0x1f7   :  { %3574 = vmatmul.mubr.f32.gmra.mrb[18].mxu0 %v537_v37  ;;  %v5043_v37 = vld [vmem:[%s5836_s12 + $0x8] sm:$0xff] }
 0x22d   :  { %v669_v18 = vpop.xlane.xlu0 %668 }
 0x22e   :  { %v672_v19 = vmul.f32 0.0078125, %v669_v18  ;;  %v5048_v18 = vld [vmem:[%s5836_s12 + $0x10] sm:$0xff] }
 0x230   :  { %v5010_v40 = vsub.f32 %v4987_v45, %v672_v19  ;;  %v710_v45 = vld [vmem:[#allocation13 + $0x10] sm:$0xff] }
 0x231   :  { %v671_v15 = vpop.xlane.xlu1 %670  ;;  %v3992_v57 = vpack.c.bf16 %v711_v27, %v710_v45 }
 0x232   :  { %v673_v20 = vmul.f32 0.0078125, %v671_v15  ;;  %v676_v23 = vmul.f32 %v5010_v40, %v5010_v40  ;;  %v5054_v15 = vld [vmem:[%s5836_s12 + $0x18] sm:$0xff] }
 0x233   :  { %3993 = vmatprep.subr.bf16.mxu1 %v3992_v57 }
 0x234   :  { %v5015_v16 = vsub.f32 %v4990_v50, %v673_v20  ;;  %678 = vadd.xlane.f32.xlu0 %v676_v23  ;;  %3995 = vmatpush3.bf16.msra.mxu1 %v3992_v57  ;;  %v714_v50 = vld [vmem:[#allocation13 + $0x30] sm:$0xff] }
 0x235   :  { %3997 = vmatprep.subr.bf16.mxu1 %v3996_v35  ;;  %v4000_v62 = vpack.c.bf16 %v715_v6, %v714_v50 }
 0x236   :  { %v677_v30 = vmul.f32 %v5015_v16, %v5015_v16 }
 0x238   :  { %680 = vadd.xlane.f32.xlu1 %v677_v30  ;;  %3999 = vmatpush3.bf16.msra.mxu1 %v3996_v35 }
 0x239   :  { %4001 = vmatprep.subr.bf16.mxu1 %v4000_v62 }
 0x23c   :  { %4003 = vmatpush3.bf16.msra.mxu1 %v4000_v62 }
 0x23d   :  { %4005 = vmatprep.subr.bf16.mxu1 %v4004_v38 }
 0x240   :  { %4007 = vmatpush3.bf16.msra.mxu1 %v4004_v38 }
 0x241   :  { %4009 = vmatprep.subr.bf16.mxu1 %v4008_v14 }
 0x244   :  { %4011 = vmatpush3.bf16.msra.mxu1 %v4008_v14 }
 0x245   :  { %4013 = vmatprep.subr.bf16.mxu1 %v4012_v44 }
 0x248   :  { %4015 = vmatpush3.bf16.msra.mxu1 %v4012_v44 }
 0x249   :  { %4017 = vmatprep.subr.bf16.mxu1 %v4016_v24 }
 0x24c   :  { %4019 = vmatpush3.bf16.msra.mxu1 %v4016_v24  ;;  %v1058_v24 = vld [vmem:[%s5837_s13] sm:$0xff] }
 0x2ae   :  { %v3554_v51 = vpop.f32.mrb[4].mxu0 }
 0x2af   :  { %v895_v52 = vpop.f32.mrb[5].mxu0  ;;  %v901_v35 = vadd.f32 %v3554_v51, %v3063_v46  ;;  %v5080_v51 = vpack.c.bf16 %v1059_v25, %v1058_v24  ;;  %v5211_v24 = vld [vmem:[#allocation2 + $0xf8] sm:$0xff]  ;;  %v5213_v25 = vld [vmem:[#allocation2 + $0xf0] sm:$0xff] }
 0x2b0   :  { %v896_v20 = vadd.f32 %v3063_v46, %v895_v52  ;;  %v1060_v52 = vld [vmem:[%s5837_s13 + $0x10] sm:$0xff] }
 0x2b2   :  { %v3557_v53 = vpop.f32.mrb[6].mxu0 }
 0x2b3   :  { %v905_v29 = vpop.f32.mrb[7].mxu0  ;;  %v911_v6 = vadd.f32 %v3557_v53, %v3063_v46  ;;  %v1061_v53 = vld [vmem:[%s5837_s13 + $0x18] sm:$0xff] }
 0x2b4   :  { %v906_v50 = vadd.f32 %v3063_v46, %v905_v29  ;;  %v5089_v29 = vpack.c.bf16 %v1061_v53, %v1060_v52 }
 0x2b6   :  { %v3560_v56 = vpop.f32.mrb[8].mxu0 }
 0x2b7   :  { %v915_v58 = vpop.f32.mrb[9].mxu0  ;;  %v921_v36 = vadd.f32 %v3560_v56, %v3063_v46  ;;  %v3062_v56 = vld [vmem:[#allocation14] ss:$0 sm:$0xff] }
 0x2b8   :  { %v916_v62 = vadd.f32 %v3063_v46, %v915_v58 }
 0x2ba   :  { %v5024_v59 = vpop.f32.mrb[10].mxu0 }
 0x2bb   :  { %v925_v0 = vpop.f32.mrb[11].mxu0  ;;  %v931_v38 = vadd.f32 %v5024_v59, %v3063_v46 }
 0x2bc   :  { %v926_v22 = vadd.f32 %v3063_v46, %v925_v0 }
 0x2be   :  { %v5026_v60 = vpop.f32.mrb[12].mxu0 }
 0x2bf   :  { %v935_v39 = vpop.f32.mrb[13].mxu0  ;;  %v941_v63 = vadd.f32 %v5026_v60, %v3063_v46 }
 0x2c0   :  { %v936_v8 = vadd.f32 %v3063_v46, %v935_v39 }
 0x2c1   :  { %v679_v61 = vpop.xlane.xlu0 %678 }
 0x2c2   :  { %v682_v1 = vmul.f32 0.0078125, %v679_v61  ;;  %v5028_v2 = vpop.f32.mrb[14].mxu0 }
 0x2c3   :  { %v945_v4 = vpop.f32.mrb[15].mxu0  ;;  %v951_v42 = vadd.f32 %v5028_v2, %v3063_v46 }
 0x2c4   :  { %v684_v3 = vadd.f32 1e-05, %v682_v1  ;;  %v946_v14 = vadd.f32 %v3063_v46, %v945_v4 }
 0x2c5   :  { %v681_v5 = vpop.xlane.xlu1 %680 }
 0x2c6   :  { %4212 = vrsqrt.f32 %v684_v3  ;;  %v683_v41 = vmul.f32 0.0078125, %v681_v5  ;;  %v5030_v7 = vpop.f32.mrb[16].mxu0 }
 0x2c7   :  { %v955_v9 = vpop.f32.mrb[17].mxu0  ;;  %v961_v44 = vadd.f32 %v5030_v7, %v3063_v46 }
 0x2c8   :  { %v685_v47 = vadd.f32 1e-05, %v683_v41  ;;  %v956_v43 = vadd.f32 %v3063_v46, %v955_v9 }
 0x2ca   :  { %4214 = vrsqrt.f32 %v685_v47  ;;  %v5032_v10 = vpop.f32.mrb[18].mxu0 }
 0x2cb   :  { %v965_v11 = vpop.f32.mrb[19].mxu0  ;;  %v971_v31 = vadd.f32 %v5032_v10, %v3063_v46 }
 0x2cc   :  { %v966_v21 = vadd.f32 %v3063_v46, %v965_v11 }
 0x2d0   :  { %v4213_v12 = vpop.eup %4212 }
 0x2d1   :  { %v688_v13 = vmul.f32 %v4213_v12, %v5010_v40 }
 0x2d3   :  { %v697_v49 = vmul.f32 %v3060_v48, %v688_v13  ;;  %3517 = vmatprep.mubr.f32.mxu1 %v688_v13 }
 0x2d4   :  { %v4215_v17 = vpop.eup %4214 }
 0x2d5   :  { %v706_v19 = vadd.f32 %v3061_v55, %v697_v49  ;;  %v689_v40 = vmul.f32 %v4215_v17, %v5015_v16 }
 0x2d7   :  { %v698_v23 = vmul.f32 %v3060_v48, %v689_v40  ;;  %3518 = vmatmul.mubr.f32.vlgmr.msra.gmra.mrb[0].mxu1 %v689_v40  ;;  %v1080_v28 = vmul.f32 %v5038_v32, %v706_v19  ;;  %v1081_v26 = vmul.f32 %v5043_v37, %v706_v19  ;;  %v1082_v54 = vmul.f32 %v5048_v18, %v706_v19 }
 0x2d8   :  { %3608 = vmatprep.mubr.f32.mxu1 %v896_v20  ;;  %v1083_v30 = vmul.f32 %v5054_v15, %v706_v19 }
 0x2d9   :  { %v5060_v45 = vadd.f32 %v3061_v55, %v698_v23  ;;  %v4052_v16 = vpack.c.bf16 %v1081_v26, %v1080_v28 }
 0x2da   :  { %v4056_v27 = vpack.c.bf16 %v1083_v30, %v1082_v54 }
 0x2db   :  { %4053 = vmatprep.subr.bf16.mxu1 %v4052_v16  ;;  %v2065_v57 = vmul.f32 %v5038_v32, %v5060_v45  ;;  %v2066_v33 = vmul.f32 %v5043_v37, %v5060_v45 }
 0x2dc   :  { %4055 = vmatpush3.bf16.xpose.msra.mxu1 %v4052_v16 }
 0x2dd   :  { %4057 = vmatprep.subr.bf16.mxu1 %v4056_v27  ;;  %v5066_v34 = vpack.c.bf16 %v2066_v33, %v2065_v57 }
 0x2df   :  { %4109 = vmatprep.subr.bf16.mxu0 %v5066_v34 }
 0x2e4   :  { %4059 = vmatpush3.bf16.xpose.msra.mxu1 %v4056_v27 }
 0x2e5   :  { %4061 = vmatprep.subr.bf16.mxu1 %v5080_v51 }
 0x2eb   :  { %3609 = vmatmul.mubr.f32.vlgmr.msra.gmra.mrb[2].mxu1 %v901_v35 }
 0x2ec   :  { %3611 = vmatprep.mubr.f32.mxu1 %v906_v50  ;;  %4063 = vmatpush3.bf16.msra.mxu1 %v5080_v51  ;;  %v5169_v50 = vld [vmem:[#allocation2 + $0x88] sm:$0xff] }
 0x2ed   :  { %4065 = vmatprep.subr.bf16.mxu1 %v5089_v29 }
 0x2ef   :  { %3612 = vmatmul.mubr.f32.gmra.mrb[4].mxu1 %v911_v6  ;;  %v5171_v6 = vld [vmem:[#allocation2 + $0x80] sm:$0xff] }
 0x2f0   :  { %3614 = vmatprep.mubr.f32.mxu1 %v916_v62  ;;  %4067 = vmatpush3.bf16.msra.mxu1 %v5089_v29  ;;  %v5175_v62 = vld [vmem:[#allocation2 + $0x98] sm:$0xff] }
 0x2f3   :  { %3615 = vmatmul.mubr.f32.gmra.mrb[6].mxu1 %v921_v36  ;;  %v5177_v36 = vld [vmem:[#allocation2 + $0x90] sm:$0xff] }
 0x2f4   :  { %3617 = vmatprep.mubr.f32.mxu1 %v926_v22  ;;  %v5181_v22 = vld [vmem:[#allocation2 + $0xa8] sm:$0xff] }
 0x2f7   :  { %3618 = vmatmul.mubr.f32.gmra.mrb[8].mxu1 %v931_v38  ;;  %v5183_v38 = vld [vmem:[#allocation2 + $0xa0] sm:$0xff] }
 0x2f8   :  { %3620 = vmatprep.mubr.f32.mxu1 %v936_v8  ;;  %v5187_v8 = vld [vmem:[#allocation2 + $0xb8] sm:$0xff] }
 0x2fb   :  { %3621 = vmatmul.mubr.f32.gmra.mrb[10].mxu1 %v941_v63  ;;  %v5189_v63 = vld [vmem:[#allocation2 + $0xb0] sm:$0xff] }
 0x2fc   :  { %3623 = vmatprep.mubr.f32.mxu1 %v946_v14  ;;  %v5193_v14 = vld [vmem:[#allocation2 + $0xc8] sm:$0xff] }
 0x2ff   :  { %3624 = vmatmul.mubr.f32.gmra.mrb[12].mxu1 %v951_v42  ;;  %v5195_v42 = vld [vmem:[#allocation2 + $0xc0] sm:$0xff] }
 0x300   :  { %3626 = vmatprep.mubr.f32.mxu1 %v956_v43  ;;  %v5199_v43 = vld [vmem:[#allocation2 + $0xd8] sm:$0xff] }
 0x303   :  { %3627 = vmatmul.mubr.f32.gmra.mrb[14].mxu1 %v961_v44  ;;  %v5201_v44 = vld [vmem:[#allocation2 + $0xd0] sm:$0xff] }
 0x304   :  { %3629 = vmatprep.mubr.f32.mxu1 %v966_v21  ;;  %v5205_v21 = vld [vmem:[#allocation2 + $0xe8] sm:$0xff] }
 0x307   :  { %3630 = vmatmul.mubr.f32.gmra.mrb[16].mxu1 %v971_v31  ;;  %v5207_v31 = vld [vmem:[#allocation2 + $0xe0] sm:$0xff] }
 0x3aa   :  { %v3519_v58 = vpop.f32.mrb[0].mxu1 }
 0x3ab   :  { %v5094_v59 = vadd.f32 %v3519_v58, %v3062_v56  ;;  %v797_v0 = vpop.f32.mrb[1].mxu1 }
 0x3ac   :  { %v5096_v60 = vadd.f32 %v3062_v56, %v797_v0 }
 0x3ae   :  { %v1084_v39 = vmul.f32 %v5038_v32, %v5096_v60  ;;  %v1085_v61 = vmul.f32 %v5043_v37, %v5096_v60 }
 0x3b0   :  { %v5102_v1 = vpack.c.bf16 %v1085_v61, %v1084_v39 }
 0x3b2   :  { %4069 = vmatprep.subr.bf16.mxu1 %v5102_v1 }
 0x3be   :  { %v5105_v2 = vpop.f32.mrb[2].mxu1 }
 0x3bf   :  { %v5107_v3 = vpop.f32.mrb[3].mxu1  ;;  %v1237_v4 = vsel %vm1233_vm1, %v5105_v2, -inf }
 0x3c0   :  { %1238 = vmax.xlane.f32.xlu1 %v1237_v4  ;;  %v1234_v5 = vsel %vm1233_vm1, %v5107_v3, -inf }
 0x3c1   :  { %1235 = vmax.xlane.f32.xlu0 %v1234_v5 }
 0x3c2   :  { %v5113_v41 = vpop.f32.mrb[4].mxu1 }
 0x3c3   :  { %v5115_v7 = vpop.f32.mrb[5].mxu1  ;;  %v1243_v47 = vsel %vm1233_vm1, %v5113_v41, -inf }
 0x3c4   :  { %1244 = vmax.xlane.f32.xlu1 %v1243_v47  ;;  %v1240_v9 = vsel %vm1233_vm1, %v5115_v7, -inf }
 0x3c5   :  { %1241 = vmax.xlane.f32.xlu0 %v1240_v9 }
 0x3c6   :  { %v5121_v10 = vpop.f32.mrb[6].mxu1 }
 0x3c7   :  { %v5123_v11 = vpop.f32.mrb[7].mxu1  ;;  %v1249_v12 = vsel %vm1233_vm1, %v5121_v10, -inf }
 0x3c8   :  { %1250 = vmax.xlane.f32.xlu1 %v1249_v12  ;;  %v1246_v48 = vsel %vm1233_vm1, %v5123_v11, -inf }
 0x3c9   :  { %1247 = vmax.xlane.f32.xlu0 %v1246_v48 }
 0x3ca   :  { %v5129_v13 = vpop.f32.mrb[8].mxu1 }
 0x3cb   :  { %v5131_v55 = vpop.f32.mrb[9].mxu1  ;;  %v1255_v46 = vsel %vm1233_vm1, %v5129_v13, -inf }
 0x3cc   :  { %1256 = vmax.xlane.f32.xlu1 %v1255_v46  ;;  %v1252_v49 = vsel %vm1233_vm1, %v5131_v55, -inf }
 0x3cd   :  { %1253 = vmax.xlane.f32.xlu0 %v1252_v49 }
 0x3ce   :  { %v5137_v17 = vpop.f32.mrb[10].mxu1 }
 0x3cf   :  { %v5139_v32 = vpop.f32.mrb[11].mxu1  ;;  %v1261_v37 = vsel %vm1233_vm1, %v5137_v17, -inf }
 0x3d0   :  { %1262 = vmax.xlane.f32.xlu1 %v1261_v37  ;;  %v1258_v19 = vsel %vm1233_vm1, %v5139_v32, -inf }
 0x3d1   :  { %1259 = vmax.xlane.f32.xlu0 %v1258_v19 }
 0x3d2   :  { %v5145_v40 = vpop.f32.mrb[12].mxu1 }
 0x3d3   :  { %v5147_v20 = vpop.f32.mrb[13].mxu1  ;;  %v1267_v23 = vsel %vm1233_vm1, %v5145_v40, -inf }
 0x3d4   :  { %1268 = vmax.xlane.f32.xlu1 %v1267_v23  ;;  %v1264_v28 = vsel %vm1233_vm1, %v5147_v20, -inf }
 0x3d5   :  { %1265 = vmax.xlane.f32.xlu0 %v1264_v28  ;;  %v1086_v28 = vmul.f32 %v5048_v18, %v5096_v60 }
 0x3d6   :  { %v5153_v26 = vpop.f32.mrb[14].mxu1 }
 0x3d7   :  { %v5155_v54 = vpop.f32.mrb[15].mxu1  ;;  %v1273_v30 = vsel %vm1233_vm1, %v5153_v26, -inf }
 0x3d8   :  { %1274 = vmax.xlane.f32.xlu1 %v1273_v30  ;;  %v1270_v16 = vsel %vm1233_vm1, %v5155_v54, -inf }
 0x3d9   :  { %1271 = vmax.xlane.f32.xlu0 %v1270_v16 }
 0x3da   :  { %v5161_v27 = vpop.f32.mrb[16].mxu1 }
 0x3db   :  { %v5163_v57 = vpop.f32.mrb[17].mxu1  ;;  %v1279_v33 = vsel %vm1233_vm1, %v5161_v27, -inf }
 0x3dc   :  { %1280 = vmax.xlane.f32.xlu1 %v1279_v33  ;;  %v1276_v35 = vsel %vm1233_vm1, %v5163_v57, -inf }
 0x3dd   :  { %1277 = vmax.xlane.f32.xlu0 %v1276_v35 }
 0x3e0   :  { %235 = vadd.xlane.f32.xlu1 %v5169_v50 }
 0x3e1   :  { %233 = vadd.xlane.f32.xlu0 %v5171_v6 }
 0x3e4   :  { %239 = vadd.xlane.f32.xlu1 %v5175_v62 }
 0x3e5   :  { %237 = vadd.xlane.f32.xlu0 %v5177_v36 }
 0x3e8   :  { %243 = vadd.xlane.f32.xlu1 %v5181_v22 }
 0x3e9   :  { %241 = vadd.xlane.f32.xlu0 %v5183_v38 }
 0x3ec   :  { %247 = vadd.xlane.f32.xlu1 %v5187_v8 }
 0x3ed   :  { %245 = vadd.xlane.f32.xlu0 %v5189_v63 }
 0x3f0   :  { %251 = vadd.xlane.f32.xlu1 %v5193_v14 }
 0x3f1   :  { %249 = vadd.xlane.f32.xlu0 %v5195_v42 }
 0x3f4   :  { %255 = vadd.xlane.f32.xlu1 %v5199_v43 }
 0x3f5   :  { %253 = vadd.xlane.f32.xlu0 %v5201_v44 }
 0x3f8   :  { %259 = vadd.xlane.f32.xlu1 %v5205_v21 }
 0x3f9   :  { %257 = vadd.xlane.f32.xlu0 %v5207_v31 }
 0x3fc   :  { %263 = vadd.xlane.f32.xlu1 %v5211_v24 }
 0x3fd   :  { %261 = vadd.xlane.f32.xlu0 %v5213_v25 }
 0x44d   :  { %v1239_v52 = vpop.xlane.xlu1 %1238 }
 0x44e   :  { %v1283_v53 = vsub.f32 %v5105_v2, %v1239_v52  ;;  %v1236_v56 = vpop.xlane.xlu0 %1235  ;;  %v1063_v52 = vld [vmem:[#allocation16] sm:$0xff] }
 0x44f   :  { %v1282_v58 = vsub.f32 %v5107_v3, %v1236_v56 }
 0x450   :  { %v1300_v0 = vmul.f32 1.442695, %v1283_v53  ;;  %v1064_v53 = vld [vmem:[#allocation16 + $0x8] sm:$0xff] }
 0x451   :  { %v1298_v39 = vmul.f32 1.442695, %v1282_v58  ;;  %v1245_v61 = vpop.xlane.xlu1 %1244 }
 0x452   :  { %v1285_v4 = vsub.f32 %v5113_v41, %v1245_v61  ;;  %v1242_v5 = vpop.xlane.xlu0 %1241 }
 0x453   :  { %4216 = vpow2.f32 %v1298_v39  ;;  %v1284_v47 = vsub.f32 %v5115_v7, %v1242_v5 }
 0x454   :  { %4218 = vpow2.f32 %v1300_v0  ;;  %v1304_v9 = vmul.f32 1.442695, %v1285_v4  ;;  %v5242_v0 = vpack.c.bf16 %v1064_v53, %v1063_v52 }
 0x455   :  { %v1302_v12 = vmul.f32 1.442695, %v1284_v47  ;;  %v1251_v48 = vpop.xlane.xlu1 %1250 }
 0x456   :  { %v1287_v46 = vsub.f32 %v5121_v10, %v1251_v48  ;;  %v1248_v49 = vpop.xlane.xlu0 %1247  ;;  %v1087_v10 = vmul.f32 %v5054_v15, %v5096_v60 }
 0x457   :  { %4220 = vpow2.f32 %v1302_v12  ;;  %v1286_v2 = vsub.f32 %v5123_v11, %v1248_v49 }
 0x458   :  { %4222 = vpow2.f32 %v1304_v9  ;;  %v1308_v3 = vmul.f32 1.442695, %v1287_v46  ;;  %v4072_v15 = vpack.c.bf16 %v1087_v10, %v1086_v28 }
 0x459   :  { %v1306_v37 = vmul.f32 1.442695, %v1286_v2  ;;  %v1257_v19 = vpop.xlane.xlu1 %1256 }
 0x45a   :  { %v1289_v41 = vsub.f32 %v5129_v13, %v1257_v19  ;;  %v1254_v23 = vpop.xlane.xlu0 %1253 }
 0x45b   :  { %4224 = vpow2.f32 %v1306_v37  ;;  %v1288_v7 = vsub.f32 %v5131_v55, %v1254_v23 }
 0x45c   :  { %4226 = vpow2.f32 %v1308_v3  ;;  %v1312_v30 = vmul.f32 1.442695, %v1289_v41 }
 0x45d   :  { %v5229_v16 = vpop.eup %4216  ;;  %v1310_v11 = vmul.f32 1.442695, %v1288_v7  ;;  %v1263_v33 = vpop.xlane.xlu1 %1262 }
 0x45e   :  { %v5231_v35 = vpop.eup %4218  ;;  %v1291_v13 = vsub.f32 %v5137_v17, %v1263_v33  ;;  %3640 = vmatprep.mubr.msk.f32.mxu1 %vm1233_vm1, %v5229_v16  ;;  %v1260_v55 = vpop.xlane.xlu0 %1259 }
 0x45f   :  { %4228 = vpow2.f32 %v1310_v11  ;;  %v1290_v18 = vsub.f32 %v5139_v32, %v1260_v55  ;;  %3641 = vmatmul.mubr.msk.f32.vlgmr.msra.gmra.mrb[18].mxu1 %vm1233_vm1, %v5231_v35 }
 0x460   :  { %4230 = vpow2.f32 %v1312_v30  ;;  %v1316_v60 = vmul.f32 1.442695, %v1291_v13  ;;  %4071 = vmatpush3.bf16.msra.mxu1 %v5102_v1 }
 0x461   :  { %v5240_v56 = vpop.eup %4220  ;;  %v1314_v17 = vmul.f32 1.442695, %v1290_v18  ;;  %4073 = vmatprep.subr.bf16.mxu1 %v4072_v15  ;;  %v1269_v58 = vpop.xlane.xlu1 %1268 }
 0x462   :  { %v5244_v39 = vpop.eup %4222  ;;  %v1293_v61 = vsub.f32 %v5145_v40, %v1269_v58  ;;  %3643 = vmatprep.mubr.msk.f32.mxu1 %vm1233_vm1, %v5240_v56  ;;  %v1266_v32 = vpop.xlane.xlu0 %1265 }
 0x463   :  { %4232 = vpow2.f32 %v1314_v17  ;;  %v1292_v4 = vsub.f32 %v5147_v20, %v1266_v32  ;;  %3644 = vmatmul.mubr.msk.f32.gmra.mrb[20].mxu1 %vm1233_vm1, %v5244_v39 }
 0x464   :  { %4234 = vpow2.f32 %v1316_v60  ;;  %v1320_v1 = vmul.f32 1.442695, %v1293_v61  ;;  %4075 = vmatpush3.bf16.msra.mxu1 %v4072_v15 }
 0x465   :  { %v5252_v5 = vpop.eup %4224  ;;  %v1318_v47 = vmul.f32 1.442695, %v1292_v4  ;;  %v1275_v9 = vpop.xlane.xlu1 %1274  ;;  %4077 = vmatprep.subr.bf16.mxu1 %v5242_v0 }
 0x466   :  { %v5255_v40 = vpop.eup %4226  ;;  %v1295_v12 = vsub.f32 %v5153_v26, %v1275_v9  ;;  %3646 = vmatprep.mubr.msk.f32.mxu1 %vm1233_vm1, %v5252_v5  ;;  %v1272_v20 = vpop.xlane.xlu0 %1271 }
 0x467   :  { %4236 = vpow2.f32 %v1318_v47  ;;  %v1294_v48 = vsub.f32 %v5155_v54, %v1272_v20  ;;  %3647 = vmatmul.mubr.msk.f32.gmra.mrb[22].mxu1 %vm1233_vm1, %v5255_v40 }
 0x468   :  { %4238 = vpow2.f32 %v1320_v1  ;;  %v1324_v46 = vmul.f32 1.442695, %v1295_v12 }
 0x469   :  { %v5263_v49 = vpop.eup %4228  ;;  %v1322_v2 = vmul.f32 1.442695, %v1294_v48  ;;  %v1281_v3 = vpop.xlane.xlu1 %1280 }
 0x46a   :  { %v5265_v37 = vpop.eup %4230  ;;  %v1297_v26 = vsub.f32 %v5161_v27, %v1281_v3  ;;  %3649 = vmatprep.mubr.msk.f32.mxu1 %vm1233_vm1, %v5263_v49  ;;  %v1278_v19 = vpop.xlane.xlu0 %1277 }
 0x46b   :  { %4240 = vpow2.f32 %v1322_v2  ;;  %v1296_v54 = vsub.f32 %v5163_v57, %v1278_v19  ;;  %3650 = vmatmul.mubr.msk.f32.gmra.mrb[24].mxu1 %vm1233_vm1, %v5265_v37  ;;  %v1065_v19 = vld [vmem:[#allocation16 + $0x10] sm:$0xff] }
 0x46c   :  { %4242 = vpow2.f32 %v1324_v46  ;;  %v1328_v41 = vmul.f32 1.442695, %v1297_v26 }
 0x46d   :  { %v5273_v23 = vpop.eup %4232  ;;  %v1326_v7 = vmul.f32 1.442695, %v1296_v54  ;;  %v236_v28 = vpop.xlane.xlu1 %235  ;;  %v1066_v54 = vld [vmem:[#allocation16 + $0x18] sm:$0xff] }
 0x46e   :  { %v5275_v10 = vpop.eup %4234  ;;  %v283_v30 = vmul.f32 0.0078125, %v236_v28  ;;  %3652 = vmatprep.mubr.msk.f32.mxu1 %vm1233_vm1, %v5273_v23  ;;  %v234_v27 = vpop.xlane.xlu0 %233 }
 0x46f   :  { %4244 = vpow2.f32 %v1326_v7  ;;  %v282_v11 = vmul.f32 0.0078125, %v234_v27  ;;  %3653 = vmatmul.mubr.msk.f32.gmra.mrb[26].mxu1 %vm1233_vm1, %v5275_v10 }
 0x470   :  { %4246 = vpow2.f32 %v1328_v41  ;;  %v5282_v57 = vsub.f32 %v5169_v50, %v283_v30 }
 0x471   :  { %v5284_v33 = vpop.eup %4236  ;;  %v5287_v13 = vsub.f32 %v5171_v6, %v282_v11  ;;  %v240_v55 = vpop.xlane.xlu1 %239 }
 0x472   :  { %v5289_v52 = vpop.eup %4238  ;;  %v285_v53 = vmul.f32 0.0078125, %v240_v55  ;;  %3655 = vmatprep.mubr.msk.f32.mxu1 %vm1233_vm1, %v5284_v33  ;;  %v238_v18 = vpop.xlane.xlu0 %237  ;;  %v347_v15 = vmul.f32 %v5282_v57, %v5282_v57  ;;  %v5345_v55 = vpack.c.bf16 %v1066_v54, %v1065_v19 }
 0x473   :  { %v284_v60 = vmul.f32 0.0078125, %v238_v18  ;;  %3656 = vmatmul.mubr.msk.f32.gmra.mrb[28].mxu1 %vm1233_vm1, %v5289_v52  ;;  %v346_v50 = vmul.f32 %v5287_v13, %v5287_v13  ;;  %v1068_v18 = vld [vmem:[#allocation16 + $0x28] sm:$0xff] }
 0x474   :  { %v5300_v6 = vsub.f32 %v5175_v62, %v285_v53  ;;  %396 = vadd.xlane.f32.xlu1 %v347_v15 }
 0x475   :  { %v5302_v17 = vpop.eup %4240  ;;  %v5305_v58 = vsub.f32 %v5177_v36, %v284_v60  ;;  %v244_v61 = vpop.xlane.xlu1 %243  ;;  %394 = vadd.xlane.f32.xlu0 %v346_v50 }
 0x476   :  { %v5307_v32 = vpop.eup %4242  ;;  %v287_v4 = vmul.f32 0.0078125, %v244_v61  ;;  %3658 = vmatprep.mubr.msk.f32.mxu1 %vm1233_vm1, %v5302_v17  ;;  %v242_v1 = vpop.xlane.xlu0 %241  ;;  %v349_v47 = vmul.f32 %v5300_v6, %v5300_v6 }
 0x477   :  { %v286_v62 = vmul.f32 0.0078125, %v242_v1  ;;  %3659 = vmatmul.mubr.msk.f32.gmra.mrb[30].mxu1 %vm1233_vm1, %v5307_v32  ;;  %v348_v36 = vmul.f32 %v5305_v58, %v5305_v58  ;;  %v1069_v1 = vld [vmem:[#allocation16 + $0x30] sm:$0xff] }
 0x478   :  { %v5318_v9 = vsub.f32 %v5181_v22, %v287_v4  ;;  %400 = vadd.xlane.f32.xlu1 %v349_v47 }
 0x479   :  { %v5320_v12 = vpop.eup %4244  ;;  %v5323_v20 = vsub.f32 %v5183_v38, %v286_v62  ;;  %v248_v48 = vpop.xlane.xlu1 %247  ;;  %398 = vadd.xlane.f32.xlu0 %v348_v36 }
 0x47a   :  { %v5325_v46 = vpop.eup %4246  ;;  %v289_v2 = vmul.f32 0.0078125, %v248_v48  ;;  %3661 = vmatprep.mubr.msk.f32.mxu1 %vm1233_vm1, %v5320_v12  ;;  %v246_v3 = vpop.xlane.xlu0 %245  ;;  %v351_v26 = vmul.f32 %v5318_v9, %v5318_v9 }
 0x47b   :  { %v288_v22 = vmul.f32 0.0078125, %v246_v3  ;;  %3662 = vmatmul.mubr.msk.f32.gmra.mrb[32].mxu1 %vm1233_vm1, %v5325_v46  ;;  %v350_v38 = vmul.f32 %v5323_v20, %v5323_v20 }
 0x47c   :  { %v5336_v41 = vsub.f32 %v5187_v8, %v289_v2  ;;  %404 = vadd.xlane.f32.xlu1 %v351_v26  ;;  %3672 = vmatprep.mubr.msk.f32.mxu1 %vm1233_vm1, %v5229_v16  ;;  %v1067_v16 = vld [vmem:[#allocation16 + $0x20] sm:$0xff] }
 0x47d   :  { %v5341_v7 = vsub.f32 %v5189_v63, %v288_v22  ;;  %v252_v28 = vpop.xlane.xlu1 %251  ;;  %402 = vadd.xlane.f32.xlu0 %v350_v38  ;;  %v1071_v26 = vld [vmem:[#allocation16 + $0x40] sm:$0xff] }
 0x47e   :  { %v291_v30 = vmul.f32 0.0078125, %v252_v28  ;;  %v250_v27 = vpop.xlane.xlu0 %249  ;;  %v353_v11 = vmul.f32 %v5336_v41, %v5336_v41 }
 0x47f   :  { %v290_v53 = vmul.f32 0.0078125, %v250_v27  ;;  %3673 = vmatmul.mubr.msk.f32.vlgmr.msra.gmra.mrb[34].mxu1 %vm1233_vm1, %v5231_v35  ;;  %v352_v8 = vmul.f32 %v5341_v7, %v5341_v7  ;;  %v1073_v27 = vld [vmem:[#allocation16 + $0x50] sm:$0xff] }
 0x480   :  { %v5352_v63 = vsub.f32 %v5193_v14, %v291_v30  ;;  %4079 = vmatpush3.bf16.msra.mxu1 %v5242_v0  ;;  %408 = vadd.xlane.f32.xlu1 %v353_v11  ;;  %v5363_v14 = vpack.c.bf16 %v1068_v18, %v1067_v16  ;;  %v1075_v16 = vld [vmem:[#allocation16 + $0x60] sm:$0xff]  ;;  %v1077_v18 = vld [vmem:[#allocation16 + $0x70] sm:$0xff] }
 0x481   :  { %v5356_v15 = vsub.f32 %v5195_v42, %v290_v53  ;;  %3675 = vmatprep.mubr.msk.f32.mxu1 %vm1233_vm1, %v5240_v56  ;;  %v256_v60 = vpop.xlane.xlu1 %255  ;;  %406 = vadd.xlane.f32.xlu0 %v352_v8  ;;  %v1070_v56 = vld [vmem:[#allocation16 + $0x38] sm:$0xff] }
 0x482   :  { %v293_v35 = vmul.f32 0.0078125, %v256_v60  ;;  %4081 = vmatprep.subr.bf16.mxu1 %v5345_v55  ;;  %v254_v50 = vpop.xlane.xlu0 %253  ;;  %v355_v61 = vmul.f32 %v5352_v63, %v5352_v63  ;;  %v1078_v60 = vld [vmem:[#allocation16 + $0x78] sm:$0xff] }
 0x483   :  { %v292_v4 = vmul.f32 0.0078125, %v254_v50  ;;  %3676 = vmatmul.mubr.msk.f32.gmra.mrb[36].mxu1 %vm1233_vm1, %v5244_v39  ;;  %v354_v42 = vmul.f32 %v5356_v15, %v5356_v15 }
 0x484   :  { %v5370_v47 = vsub.f32 %v5199_v43, %v293_v35  ;;  %4083 = vmatpush3.bf16.msra.mxu1 %v5345_v55  ;;  %412 = vadd.xlane.f32.xlu1 %v355_v61  ;;  %v5381_v43 = vpack.c.bf16 %v1070_v56, %v1069_v1 }
 0x485   :  { %v5374_v62 = vsub.f32 %v5201_v44, %v292_v4  ;;  %3678 = vmatprep.mubr.msk.f32.mxu1 %vm1233_vm1, %v5252_v5  ;;  %v260_v36 = vpop.xlane.xlu1 %259  ;;  %410 = vadd.xlane.f32.xlu0 %v354_v42  ;;  %v1072_v5 = vld [vmem:[#allocation16 + $0x48] sm:$0xff] }
 0x486   :  { %v295_v39 = vmul.f32 0.0078125, %v260_v36  ;;  %4085 = vmatprep.subr.bf16.mxu1 %v5363_v14  ;;  %v258_v48 = vpop.xlane.xlu0 %257  ;;  %v357_v2 = vmul.f32 %v5370_v47, %v5370_v47 }
 0x487   :  { %v294_v3 = vmul.f32 0.0078125, %v258_v48  ;;  %3679 = vmatmul.mubr.msk.f32.gmra.mrb[38].mxu1 %vm1233_vm1, %v5255_v40  ;;  %v356_v44 = vmul.f32 %v5374_v62, %v5374_v62 }
 0x488   :  { %v5388_v22 = vsub.f32 %v5205_v21, %v295_v39  ;;  %4087 = vmatpush3.bf16.msra.mxu1 %v5363_v14  ;;  %416 = vadd.xlane.f32.xlu1 %v357_v2  ;;  %v5399_v21 = vpack.c.bf16 %v1072_v5, %v1071_v26 }
 0x489   :  { %v5392_v38 = vsub.f32 %v5207_v31, %v294_v3  ;;  %3681 = vmatprep.mubr.msk.f32.mxu1 %vm1233_vm1, %v5263_v49  ;;  %v264_v19 = vpop.xlane.xlu1 %263  ;;  %414 = vadd.xlane.f32.xlu0 %v356_v44  ;;  %v1074_v49 = vld [vmem:[#allocation16 + $0x58] sm:$0xff] }
 0x48a   :  { %v297_v40 = vmul.f32 0.0078125, %v264_v19  ;;  %4089 = vmatprep.subr.bf16.mxu1 %v5381_v43  ;;  %v262_v54 = vpop.xlane.xlu0 %261  ;;  %v359_v28 = vmul.f32 %v5388_v22, %v5388_v22  ;;  %v5417_v8 = vpack.c.bf16 %v1074_v49, %v1073_v27 }
 0x48b   :  { %v296_v30 = vmul.f32 0.0078125, %v262_v54  ;;  %3682 = vmatmul.mubr.msk.f32.gmra.mrb[40].mxu1 %vm1233_vm1, %v5265_v37  ;;  %v358_v31 = vmul.f32 %v5392_v38, %v5392_v38 }
 0x48c   :  { %v5406_v11 = vsub.f32 %v5211_v24, %v297_v40  ;;  %4091 = vmatpush3.bf16.msra.mxu1 %v5381_v43  ;;  %420 = vadd.xlane.f32.xlu1 %v359_v28  ;;  %v1076_v24 = vld [vmem:[#allocation16 + $0x68] sm:$0xff] }
 0x48d   :  { %v5410_v53 = vsub.f32 %v5213_v25, %v296_v30  ;;  %3684 = vmatprep.mubr.msk.f32.mxu1 %vm1233_vm1, %v5273_v23  ;;  %418 = vadd.xlane.f32.xlu0 %v358_v31  ;;  %v5426_v23 = vpack.c.bf16 %v1076_v24, %v1075_v16 }
 0x48e   :  { %4093 = vmatprep.subr.bf16.mxu1 %v5399_v21  ;;  %v361_v37 = vmul.f32 %v5406_v11, %v5406_v11 }
 0x48f   :  { %3685 = vmatmul.mubr.msk.f32.gmra.mrb[42].mxu1 %vm1233_vm1, %v5275_v10  ;;  %v360_v25 = vmul.f32 %v5410_v53, %v5410_v53  ;;  %v5435_v10 = vpack.c.bf16 %v1078_v60, %v1077_v18 }
 0x490   :  { %4095 = vmatpush3.bf16.msra.mxu1 %v5399_v21  ;;  %424 = vadd.xlane.f32.xlu1 %v361_v37 }
 0x491   :  { %3687 = vmatprep.mubr.msk.f32.mxu1 %vm1233_vm1, %v5284_v33  ;;  %422 = vadd.xlane.f32.xlu0 %v360_v25 }
 0x492   :  { %4097 = vmatprep.subr.bf16.mxu1 %v5417_v8 }
 0x493   :  { %3688 = vmatmul.mubr.msk.f32.gmra.mrb[44].mxu1 %vm1233_vm1, %v5289_v52 }
 0x494   :  { %4099 = vmatpush3.bf16.msra.mxu1 %v5417_v8  ;;  %3690 = vmatprep.mubr.msk.f32.mxu1 %vm1233_vm1, %v5302_v17 }
 0x495   :  { %4101 = vmatprep.subr.bf16.mxu1 %v5426_v23 }
 0x497   :  { %3691 = vmatmul.mubr.msk.f32.gmra.mrb[46].mxu1 %vm1233_vm1, %v5307_v32 }
 0x498   :  { %4103 = vmatpush3.bf16.msra.mxu1 %v5426_v23  ;;  %3693 = vmatprep.mubr.msk.f32.mxu1 %vm1233_vm1, %v5320_v12 }
 0x499   :  { %4105 = vmatprep.subr.bf16.mxu1 %v5435_v10 }
 0x49b   :  { %3694 = vmatmul.mubr.msk.f32.gmra.mrb[48].mxu1 %vm1233_vm1, %v5325_v46 }
 0x49c   :  { %4107 = vmatpush3.bf16.msra.mxu1 %v5435_v10 }
 0x49d   :  { %4164 = vmatprep.subr.bf16.mxu1 %v5066_v34 }
 0x501   :  { %v397_v33 = vpop.xlane.xlu1 %396 }
 0x502   :  { %v443_v52 = vmul.f32 0.0078125, %v397_v33  ;;  %v395_v17 = vpop.xlane.xlu0 %394 }
 0x503   :  { %v442_v35 = vmul.f32 0.0078125, %v395_v17 }
 0x504   :  { %v475_v50 = vadd.f32 1e-05, %v443_v52 }
 0x505   :  { %v474_v32 = vadd.f32 1e-05, %v442_v35  ;;  %v401_v61 = vpop.xlane.xlu1 %400 }
 0x506   :  { %4248 = vrsqrt.f32 %v475_v50  ;;  %v445_v4 = vmul.f32 0.0078125, %v401_v61  ;;  %v399_v42 = vpop.xlane.xlu0 %398 }
 0x507   :  { %4250 = vrsqrt.f32 %v474_v32  ;;  %v444_v12 = vmul.f32 0.0078125, %v399_v42 }
 0x508   :  { %v477_v1 = vadd.f32 1e-05, %v445_v4 }
 0x509   :  { %v476_v56 = vadd.f32 1e-05, %v444_v12  ;;  %v405_v36 = vpop.xlane.xlu1 %404 }
 0x50a   :  { %4252 = vrsqrt.f32 %v477_v1  ;;  %v447_v46 = vmul.f32 0.0078125, %v405_v36  ;;  %v403_v39 = vpop.xlane.xlu0 %402 }
 0x50b   :  { %4254 = vrsqrt.f32 %v476_v56  ;;  %v446_v48 = vmul.f32 0.0078125, %v403_v39 }
 0x50c   :  { %v479_v2 = vadd.f32 1e-05, %v447_v46 }
 0x50d   :  { %v478_v3 = vadd.f32 1e-05, %v446_v48  ;;  %v409_v44 = vpop.xlane.xlu1 %408 }
 0x50e   :  { %4256 = vrsqrt.f32 %v479_v2  ;;  %v449_v26 = vmul.f32 0.0078125, %v409_v44  ;;  %v407_v5 = vpop.xlane.xlu0 %406 }
 0x50f   :  { %4258 = vrsqrt.f32 %v478_v3  ;;  %v448_v19 = vmul.f32 0.0078125, %v407_v5 }
 0x510   :  { %v4249_v40 = vpop.eup %4248  ;;  %v481_v54 = vadd.f32 1e-05, %v449_v26 }
 0x511   :  { %v4251_v28 = vpop.eup %4250  ;;  %v480_v30 = vadd.f32 1e-05, %v448_v19  ;;  %v413_v31 = vpop.xlane.xlu1 %412  ;;  %v539_v24 = vmul.f32 %v4249_v40, %v5282_v57 }
 0x512   :  { %4260 = vrsqrt.f32 %v481_v54  ;;  %v451_v27 = vmul.f32 0.0078125, %v413_v31  ;;  %v411_v49 = vpop.xlane.xlu0 %410  ;;  %v538_v37 = vmul.f32 %v4251_v28, %v5287_v13 }
 0x513   :  { %4262 = vrsqrt.f32 %v480_v30  ;;  %v450_v16 = vmul.f32 0.0078125, %v411_v49 }
 0x514   :  { %v4253_v25 = vpop.eup %4252  ;;  %v483_v18 = vadd.f32 1e-05, %v451_v27  ;;  %3576 = vmatprep.mubr.f32.mxu0 %v538_v37 }
 0x515   :  { %v4255_v60 = vpop.eup %4254  ;;  %v482_v33 = vadd.f32 1e-05, %v450_v16  ;;  %v417_v52 = vpop.xlane.xlu1 %416  ;;  %3577 = vmatmul.mubr.f32.gmra.mrb[20].mxu0 %v539_v24  ;;  %v541_v13 = vmul.f32 %v4253_v25, %v5300_v6 }
 0x516   :  { %4264 = vrsqrt.f32 %v483_v18  ;;  %v453_v17 = vmul.f32 0.0078125, %v417_v52  ;;  %v415_v35 = vpop.xlane.xlu0 %414  ;;  %v540_v50 = vmul.f32 %v4255_v60, %v5305_v58 }
 0x517   :  { %4266 = vrsqrt.f32 %v482_v33  ;;  %v452_v32 = vmul.f32 0.0078125, %v415_v35 }
 0x518   :  { %v4257_v61 = vpop.eup %4256  ;;  %v485_v4 = vadd.f32 1e-05, %v453_v17  ;;  %3579 = vmatprep.mubr.f32.mxu0 %v540_v50  ;;  %v5473_v17 = vld [vmem:[%s5836_s12 + $0x18] sm:$0xff] }
 0x519   :  { %v4259_v57 = vpop.eup %4258  ;;  %v484_v42 = vadd.f32 1e-05, %v452_v32  ;;  %v421_v12 = vpop.xlane.xlu1 %420  ;;  %3580 = vmatmul.mubr.f32.gmra.mrb[22].mxu0 %v541_v13  ;;  %v543_v58 = vmul.f32 %v4257_v61, %v5318_v9  ;;  %v2068_v35 = vmul.f32 %v5473_v17, %v5060_v45 }
 0x51a   :  { %4268 = vrsqrt.f32 %v485_v4  ;;  %v455_v1 = vmul.f32 0.0078125, %v421_v12  ;;  %v419_v56 = vpop.xlane.xlu0 %418  ;;  %v542_v36 = vmul.f32 %v4259_v57, %v5323_v20 }
 0x51b   :  { %4270 = vrsqrt.f32 %v484_v42  ;;  %v454_v46 = vmul.f32 0.0078125, %v419_v56 }
 0x51c   :  { %v4261_v39 = vpop.eup %4260  ;;  %v487_v48 = vadd.f32 1e-05, %v455_v1  ;;  %3582 = vmatprep.mubr.f32.mxu0 %v542_v36  ;;  %v4378_v1 = vld [vmem:[%s5836_s12] sm:$0xff]  ;;  %v4379_v36 = vld [vmem:[%s5836_s12 + $0x8] sm:$0xff] }
 0x51d   :  { %v4263_v6 = vpop.eup %4262  ;;  %v486_v2 = vadd.f32 1e-05, %v454_v46  ;;  %v425_v3 = vpop.xlane.xlu1 %424  ;;  %3583 = vmatmul.mubr.f32.gmra.mrb[24].mxu0 %v543_v58  ;;  %v545_v20 = vmul.f32 %v4261_v39, %v5336_v41  ;;  %v2069_v56 = vmul.f32 %v4378_v1, %v5094_v59  ;;  %v2070_v46 = vmul.f32 %v4379_v36, %v5094_v59 }
 0x51e   :  { %4272 = vrsqrt.f32 %v487_v48  ;;  %v457_v44 = vmul.f32 0.0078125, %v425_v3  ;;  %v423_v26 = vpop.xlane.xlu0 %422  ;;  %v544_v5 = vmul.f32 %v4263_v6, %v5341_v7 }
 0x51f   :  { %4274 = vrsqrt.f32 %v486_v2  ;;  %v456_v19 = vmul.f32 0.0078125, %v423_v26  ;;  %v4124_v2 = vpack.c.bf16 %v2070_v46, %v2069_v56 }
 0x520   :  { %v4265_v40 = vpop.eup %4264  ;;  %v489_v54 = vadd.f32 1e-05, %v457_v44  ;;  %3585 = vmatprep.mubr.f32.mxu0 %v544_v5 }
 0x521   :  { %v4267_v9 = vpop.eup %4266  ;;  %v488_v28 = vadd.f32 1e-05, %v456_v19  ;;  %3586 = vmatmul.mubr.f32.gmra.mrb[26].mxu0 %v545_v20  ;;  %v547_v31 = vmul.f32 %v4265_v40, %v5352_v63 }
 0x522   :  { %4276 = vrsqrt.f32 %v489_v54  ;;  %v546_v30 = vmul.f32 %v4267_v9, %v5356_v15 }
 0x523   :  { %4278 = vrsqrt.f32 %v488_v28 }
 0x524   :  { %v4269_v27 = vpop.eup %4268  ;;  %3588 = vmatprep.mubr.f32.mxu0 %v546_v30 }
 0x525   :  { %v4271_v49 = vpop.eup %4270  ;;  %3589 = vmatmul.mubr.f32.gmra.mrb[28].mxu0 %v547_v31  ;;  %v549_v41 = vmul.f32 %v4269_v27, %v5370_v47 }
 0x526   :  { %v548_v7 = vmul.f32 %v4271_v49, %v5374_v62 }
 0x528   :  { %v4273_v37 = vpop.eup %4272  ;;  %3591 = vmatprep.mubr.f32.mxu0 %v548_v7 }
 0x529   :  { %v4275_v16 = vpop.eup %4274  ;;  %3592 = vmatmul.mubr.f32.gmra.mrb[30].mxu0 %v549_v41  ;;  %v551_v25 = vmul.f32 %v4273_v37, %v5388_v22 }
 0x52a   :  { %v550_v24 = vmul.f32 %v4275_v16, %v5392_v38 }
 0x52c   :  { %v4277_v15 = vpop.eup %4276  ;;  %3594 = vmatprep.mubr.f32.mxu0 %v550_v24 }
 0x52d   :  { %v4279_v18 = vpop.eup %4278  ;;  %3595 = vmatmul.mubr.f32.gmra.mrb[32].mxu0 %v551_v25  ;;  %v553_v60 = vmul.f32 %v4277_v15, %v5406_v11 }
 0x52e   :  { %v552_v63 = vmul.f32 %v4279_v18, %v5410_v53  ;;  %v5466_v53 = vld [vmem:[%s5836_s12 + $0x10] sm:$0xff] }
 0x52f   :  { %v2067_v11 = vmul.f32 %v5466_v53, %v5060_v45 }
 0x530   :  { %3597 = vmatprep.mubr.f32.mxu0 %v552_v63 }
 0x531   :  { %3598 = vmatmul.mubr.f32.gmra.mrb[34].mxu0 %v553_v60  ;;  %v5479_v4 = vpack.c.bf16 %v2068_v35, %v2067_v11 }
 0x532   :  { %v3642_v62 = vpop.f32.mrb[18].mxu1 }
 0x533   :  { %v1444_v47 = vpop.f32.mrb[19].mxu1 }
 0x534   :  { %4280 = vrcp.f32 %v1444_v47 }
 0x535   :  { %4282 = vrcp.f32 %v3642_v62 }
 0x536   :  { %v3645_v33 = vpop.f32.mrb[20].mxu1 }
 0x537   :  { %v1454_v52 = vpop.f32.mrb[21].mxu1 }
 0x538   :  { %4284 = vrcp.f32 %v1454_v52 }
 0x539   :  { %4286 = vrcp.f32 %v3645_v33 }
 0x53a   :  { %v3648_v38 = vpop.f32.mrb[22].mxu1 }
 0x53b   :  { %v1464_v22 = vpop.f32.mrb[23].mxu1 }
 0x53c   :  { %4288 = vrcp.f32 %v1464_v22 }
 0x53d   :  { %4290 = vrcp.f32 %v3648_v38 }
 0x53e   :  { %v4281_v50 = vpop.eup %4280  ;;  %v3651_v32 = vpop.f32.mrb[24].mxu1 }
 0x53f   :  { %v4283_v13 = vpop.eup %4282  ;;  %v1474_v61 = vpop.f32.mrb[25].mxu1  ;;  %3698 = vmatprep.mubr.msk.f32.mxu0 %vm1684_vm2, %v4281_v50  ;;  %v2071_v50 = vmul.f32 %v5466_v53, %v5094_v59 }
 0x540   :  { %4292 = vrcp.f32 %v1474_v61  ;;  %3699 = vmatmul.mubr.msk.f32.vlgmr.msra.gmra.mrb[36].mxu0 %vm1684_vm2, %v4283_v13  ;;  %v5542_v13 = vld [vmem:[#allocation11] ss:$0 sm:$0xff] }
 0x541   :  { %4294 = vrcp.f32 %v3651_v32  ;;  %4111 = vmatpush3.bf16.xpose.msra.mxu0 %v5066_v34  ;;  %v2072_v32 = vmul.f32 %v5473_v17, %v5094_v59 }
 0x542   :  { %v4285_v57 = vpop.eup %4284  ;;  %4113 = vmatprep.subr.bf16.mxu0 %v5479_v4  ;;  %v3654_v42 = vpop.f32.mrb[26].mxu1 }
 0x543   :  { %v4287_v45 = vpop.eup %4286  ;;  %v1484_v12 = vpop.f32.mrb[27].mxu1  ;;  %3701 = vmatprep.mubr.msk.f32.mxu0 %vm1684_vm2, %v4285_v57 }
 0x544   :  { %4296 = vrcp.f32 %v1484_v12  ;;  %3702 = vmatmul.mubr.msk.f32.gmra.mrb[38].mxu0 %vm1684_vm2, %v4287_v45  ;;  %v4128_v12 = vpack.c.bf16 %v2072_v32, %v2071_v50 }
 0x545   :  { %4298 = vrcp.f32 %v3654_v42 }
 0x546   :  { %v4289_v58 = vpop.eup %4288  ;;  %v3657_v39 = vpop.f32.mrb[28].mxu1 }
 0x547   :  { %v4291_v48 = vpop.eup %4290  ;;  %v1494_v6 = vpop.f32.mrb[29].mxu1  ;;  %3704 = vmatprep.mubr.msk.f32.mxu0 %vm1684_vm2, %v4289_v58 }
 0x548   :  { %4300 = vrcp.f32 %v1494_v6  ;;  %3705 = vmatmul.mubr.msk.f32.gmra.mrb[40].mxu0 %vm1684_vm2, %v4291_v48 }
 0x549   :  { %4302 = vrcp.f32 %v3657_v39  ;;  %4115 = vmatpush3.bf16.xpose.msra.mxu0 %v5479_v4 }
 0x54a   :  { %v4293_v3 = vpop.eup %4292  ;;  %4125 = vmatprep.subr.bf16.mxu0 %v4124_v2  ;;  %v3660_v44 = vpop.f32.mrb[30].mxu1 }
 0x54b   :  { %v4295_v26 = vpop.eup %4294  ;;  %v1504_v5 = vpop.f32.mrb[31].mxu1  ;;  %3707 = vmatprep.mubr.msk.f32.mxu0 %vm1684_vm2, %v4293_v3 }
 0x54c   :  { %4304 = vrcp.f32 %v1504_v5  ;;  %3708 = vmatmul.mubr.msk.f32.gmra.mrb[42].mxu0 %vm1684_vm2, %v4295_v26 }
 0x54d   :  { %4306 = vrcp.f32 %v3660_v44 }
 0x54e   :  { %v4297_v19 = vpop.eup %4296  ;;  %v3663_v20 = vpop.f32.mrb[32].mxu1 }
 0x54f   :  { %v4299_v40 = vpop.eup %4298  ;;  %v1514_v54 = vpop.f32.mrb[33].mxu1  ;;  %3710 = vmatprep.mubr.msk.f32.mxu0 %vm1684_vm2, %v4297_v19 }
 0x550   :  { %4308 = vrcp.f32 %v1514_v54  ;;  %3711 = vmatmul.mubr.msk.f32.gmra.mrb[44].mxu0 %vm1684_vm2, %v4299_v40 }
 0x551   :  { %4310 = vrcp.f32 %v3663_v20 }
 0x552   :  { %v4301_v9 = vpop.eup %4300  ;;  %v5500_v28 = vpop.f32.mrb[34].mxu1 }
 0x553   :  { %v4303_v30 = vpop.eup %4302  ;;  %v5502_v31 = vpop.f32.mrb[35].mxu1  ;;  %3713 = vmatprep.mubr.msk.f32.mxu0 %vm1684_vm2, %v4301_v9 }
 0x554   :  { %3714 = vmatmul.mubr.msk.f32.gmra.mrb[46].mxu0 %vm1684_vm2, %v4303_v30 }
 0x556   :  { %v4305_v27 = vpop.eup %4304  ;;  %v5506_v49 = vpop.f32.mrb[36].mxu1 }
 0x557   :  { %v4307_v7 = vpop.eup %4306  ;;  %v5508_v41 = vpop.f32.mrb[37].mxu1  ;;  %3716 = vmatprep.mubr.msk.f32.mxu0 %vm1684_vm2, %v4305_v27 }
 0x558   :  { %3717 = vmatmul.mubr.msk.f32.gmra.mrb[48].mxu0 %vm1684_vm2, %v4307_v7 }
 0x55a   :  { %v4309_v37 = vpop.eup %4308  ;;  %v5512_v16 = vpop.f32.mrb[38].mxu1 }
 0x55b   :  { %v4311_v24 = vpop.eup %4310  ;;  %v5514_v25 = vpop.f32.mrb[39].mxu1  ;;  %3719 = vmatprep.mubr.msk.f32.mxu0 %vm1684_vm2, %v4309_v37 }
 0x55c   :  { %3720 = vmatmul.mubr.msk.f32.gmra.mrb[50].mxu0 %vm1684_vm2, %v4311_v24 }
 0x55e   :  { %v5518_v15 = vpop.f32.mrb[40].mxu1 }
 0x55f   :  { %v5520_v18 = vpop.f32.mrb[41].mxu1 }
 0x562   :  { %v5522_v63 = vpop.f32.mrb[42].mxu1 }
 0x563   :  { %v5524_v60 = vpop.f32.mrb[43].mxu1 }
 0x566   :  { %v5526_v62 = vpop.f32.mrb[44].mxu1 }
 0x567   :  { %v5528_v47 = vpop.f32.mrb[45].mxu1 }
 0x56a   :  { %v5530_v33 = vpop.f32.mrb[46].mxu1 }
 0x56b   :  { %v5532_v52 = vpop.f32.mrb[47].mxu1 }
 0x56e   :  { %v5534_v38 = vpop.f32.mrb[48].mxu1 }
 0x56f   :  { %v5536_v22 = vpop.f32.mrb[49].mxu1 }
 0x5e8   :  { %v3578_v11 = vpop.f32.mrb[20].mxu0 }
 0x5e9   :  { %v975_v35 = vpop.f32.mrb[21].mxu0  ;;  %v981_v57 = vadd.f32 %v5542_v13, %v3578_v11 }
 0x5ea   :  { %v976_v61 = vadd.f32 %v5542_v13, %v975_v35 }
 0x5ec   :  { %v3581_v42 = vpop.f32.mrb[22].mxu0  ;;  %3786 = vmatprep.mubr.f32.mxu0 %v976_v61 }
 0x5ed   :  { %v985_v45 = vpop.f32.mrb[23].mxu0  ;;  %3787 = vmatmul.mubr.f32.vlgmr.msra.gmra.mrb[52].mxu0 %v981_v57  ;;  %v991_v56 = vadd.f32 %v5542_v13, %v3581_v42 }
 0x5ee   :  { %v986_v1 = vadd.f32 %v5542_v13, %v985_v45  ;;  %4127 = vmatpush3.bf16.msra.mxu0 %v4124_v2 }
 0x5ef   :  { %4129 = vmatprep.subr.bf16.mxu0 %v4128_v12 }
 0x5f0   :  { %v3584_v53 = vpop.f32.mrb[24].mxu0  ;;  %3789 = vmatprep.mubr.f32.mxu0 %v986_v1 }
 0x5f1   :  { %v995_v59 = vpop.f32.mrb[25].mxu0  ;;  %3790 = vmatmul.mubr.f32.gmra.mrb[54].mxu0 %v991_v56  ;;  %v1001_v36 = vadd.f32 %v5542_v13, %v3584_v53 }
 0x5f2   :  { %v996_v17 = vadd.f32 %v5542_v13, %v995_v59  ;;  %4131 = vmatpush3.bf16.msra.mxu0 %v4128_v12 }
 0x5f3   :  { %4133 = vmatprep.subr.bf16.mxu0 %v5242_v0 }
 0x5f4   :  { %v3587_v46 = vpop.f32.mrb[26].mxu0  ;;  %3792 = vmatprep.mubr.f32.mxu0 %v996_v17 }
 0x5f5   :  { %v1005_v58 = vpop.f32.mrb[27].mxu0  ;;  %3793 = vmatmul.mubr.f32.gmra.mrb[56].mxu0 %v1001_v36  ;;  %v1011_v48 = vadd.f32 %v5542_v13, %v3587_v46 }
 0x5f6   :  { %v1006_v39 = vadd.f32 %v5542_v13, %v1005_v58 }
 0x5f8   :  { %v3590_v6 = vpop.f32.mrb[28].mxu0  ;;  %3795 = vmatprep.mubr.f32.mxu0 %v1006_v39 }
 0x5f9   :  { %v1015_v2 = vpop.f32.mrb[29].mxu0  ;;  %3796 = vmatmul.mubr.f32.gmra.mrb[58].mxu0 %v1011_v48  ;;  %v1021_v44 = vadd.f32 %v5542_v13, %v3590_v6 }
 0x5fa   :  { %v1016_v3 = vadd.f32 %v5542_v13, %v1015_v2 }
 0x5fc   :  { %v3593_v26 = vpop.f32.mrb[30].mxu0  ;;  %3798 = vmatprep.mubr.f32.mxu0 %v1016_v3 }
 0x5fd   :  { %v1025_v5 = vpop.f32.mrb[31].mxu0  ;;  %3799 = vmatmul.mubr.f32.gmra.mrb[60].mxu0 %v1021_v44  ;;  %v1031_v20 = vadd.f32 %v5542_v13, %v3593_v26 }
 0x5fe   :  { %v1026_v19 = vadd.f32 %v5542_v13, %v1025_v5 }
 0x600   :  { %v3596_v40 = vpop.f32.mrb[32].mxu0  ;;  %3801 = vmatprep.mubr.f32.mxu0 %v1026_v19 }
 0x601   :  { %v1035_v54 = vpop.f32.mrb[33].mxu0  ;;  %3802 = vmatmul.mubr.f32.gmra.mrb[62].mxu0 %v1031_v20 }
 0x602   :  { %v1036_v46 = vadd.f32 %v5542_v13, %v1035_v54 }
 0x604   :  { %v3599_v9 = vpop.f32.mrb[34].mxu0 }
 0x605   :  { %v1045_v30 = vpop.f32.mrb[35].mxu0 }
 0x613   :  { %v3700_v27 = vpop.f32.mrb[36].mxu0 }
 0x614   :  { %v1883_v7 = vmul.f32 %v3700_v27, %v5500_v28  ;;  %v1803_v37 = vpop.f32.mrb[37].mxu0 }
 0x615   :  { %v1882_v24 = vmul.f32 %v1803_v37, %v5502_v31 }
 0x617   :  { %v3703_v11 = vpop.f32.mrb[38].mxu0  ;;  %3754 = vmatprep.mubr.f32.mxu1 %v1882_v24 }
 0x618   :  { %v1885_v35 = vmul.f32 %v3703_v11, %v5506_v49  ;;  %v1813_v50 = vpop.f32.mrb[39].mxu0  ;;  %3755 = vmatmul.mubr.f32.vlgmr.msra.gmra.mrb[50].mxu1 %v1883_v7 }
 0x619   :  { %v1884_v32 = vmul.f32 %v1813_v50, %v5508_v41  ;;  %4166 = vmatpush3.bf16.xpose.msra.mxu1 %v5066_v34 }
 0x61a   :  { %4165 = vmatprep.subr.bf16.mxu1 %v5479_v4 }
 0x61b   :  { %v3706_v61 = vpop.f32.mrb[40].mxu0  ;;  %3757 = vmatprep.mubr.f32.mxu1 %v1884_v32 }
 0x61c   :  { %v1887_v57 = vmul.f32 %v3706_v61, %v5512_v16  ;;  %v1823_v28 = vpop.f32.mrb[41].mxu0  ;;  %3758 = vmatmul.mubr.f32.gmra.mrb[52].mxu1 %v1885_v35  ;;  %v5642_v35 = vld [vmem:[%s5835_s11] ss:$0 sm:$0xff]  ;;  %s4625_s11 = smov [#allocation17]  }
 0x61d   :  { %v1886_v31 = vmul.f32 %v1823_v28, %v5514_v25  ;;  %s3043_s2 = sshll.u32 %s4625_s11, 4  ;;  %s3044_s2 = int_to_ptr.vmem [resolvable:$true] %s3043_s2 }
 0x61e   :  { %s4580_s7 = scalar_lea.vmem %s3044_s2, 4096  ;;  %p4585_p3 = scmp.lt.s32.totalorder %s3044_s2, %s3044_s2 }
 0x61f   :  { %v3709_v42 = vpop.f32.mrb[42].mxu0  ;;  %3760 = vmatprep.mubr.f32.mxu1 %v1886_v31  ;;  %p4581_p2 = scmp.ne.s32.totalorder %s3044_s2, %s4580_s7  ;;  %p4586_p4 = scmp.lt.s32.totalorder %s4580_s7, %s4580_s7 }
 0x620   :  { %v1889_v49 = vmul.f32 %v3709_v42, %v5518_v15  ;;  %v1833_v45 = vpop.f32.mrb[43].mxu0  ;;  %3761 = vmatmul.mubr.f32.gmra.mrb[54].mxu1 %v1887_v57 }
 0x621   :  { %v1888_v41 = vmul.f32 %v1833_v45, %v5520_v18  ;;  %4167 = vmatpush3.bf16.xpose.msra.mxu1 %v5479_v4  ;;  %p4587_p5 = por %p4586_p4, %p4585_p3 }
 0x622   :  { %4117 = vmatprep.subr.bf16.mxu1 %v5080_v51 }
 0x623   :  { %v3712_v34 = vpop.f32.mrb[44].mxu0  ;;  %3763 = vmatprep.mubr.f32.mxu1 %v1888_v41  ;;  %p4588_p6 = pnand %p4587_p5, %p4581_p2 }
 0x624   :  { %v1891_v16 = vmul.f32 %v3712_v34, %v5522_v63  ;;  %v1843_v12 = vpop.f32.mrb[45].mxu0  ;;  %3764 = vmatmul.mubr.f32.gmra.mrb[56].mxu1 %v1889_v49 }
 0x625   :  { %v1890_v25 = vmul.f32 %v1843_v12, %v5524_v60 }
 0x627   :  { %v3715_v1 = vpop.f32.mrb[46].mxu0  ;;  %3766 = vmatprep.mubr.f32.mxu1 %v1890_v25 }
 0x628   :  { %v1893_v15 = vmul.f32 %v3715_v1, %v5526_v62  ;;  %v1853_v56 = vpop.f32.mrb[47].mxu0  ;;  %3767 = vmatmul.mubr.f32.gmra.mrb[58].mxu1 %v1891_v16 }
 0x629   :  { %v1892_v18 = vmul.f32 %v1853_v56, %v5528_v47  ;;  %v1041_v47 = vadd.f32 %v5542_v13, %v3596_v40 }
 0x62b   :  { %v3718_v53 = vpop.f32.mrb[48].mxu0  ;;  %3769 = vmatprep.mubr.f32.mxu1 %v1892_v18 }
 0x62c   :  { %v1895_v4 = vmul.f32 %v3718_v53, %v5530_v33  ;;  %v1863_v59 = vpop.f32.mrb[49].mxu0  ;;  %3770 = vmatmul.mubr.f32.gmra.mrb[60].mxu1 %v1893_v15  ;;  %v1046_v33 = vadd.f32 %v5542_v13, %v1045_v30 }
 0x62d   :  { %v1894_v63 = vmul.f32 %v1863_v59, %v5532_v52  ;;  %v1051_v52 = vadd.f32 %v5542_v13, %v3599_v9 }
 0x62f   :  { %v3721_v17 = vpop.f32.mrb[50].mxu0  ;;  %3772 = vmatprep.mubr.f32.mxu1 %v1894_v63 }
 0x630   :  { %v1897_v60 = vmul.f32 %v3721_v17, %v5534_v38  ;;  %v1873_v36 = vpop.f32.mrb[51].mxu0  ;;  %3773 = vmatmul.mubr.f32.gmra.mrb[62].mxu1 %v1895_v4  ;;  %v5587_v38 = vld [vmem:[%s5838_s14] sm:$0xf] }
 0x631   :  { %v1896_v62 = vmul.f32 %v1873_v36, %v5536_v22 }
 0x633   :  { %3775 = vmatprep.mubr.f32.mxu1 %v1896_v62 }
 0x634   :  { %3776 = vmatmul.mubr.f32.gmra.mrb[64].mxu1 %v1897_v60 }
 0x635   :  { %3804 = vmatprep.mubr.f32.mxu1 %v1036_v46 }
 0x638   :  { %3805 = vmatmul.mubr.f32.vlgmr.msra.gmra.mrb[66].mxu1 %v1041_v47 }
 0x639   :  { %3807 = vmatprep.mubr.f32.mxu1 %v1046_v33  ;;  %4119 = vmatpush3.bf16.msra.mxu1 %v5080_v51 }
 0x63a   :  { %4121 = vmatprep.subr.bf16.mxu1 %v5089_v29 }
 0x63c   :  { %3808 = vmatmul.mubr.f32.gmra.mrb[68].mxu1 %v1051_v52 }
 0x63d   :  { %4123 = vmatpush3.bf16.msra.mxu1 %v5089_v29 }
 0x63e   :  { %3874 = vmatprep.subr.msk.mxu1 %vm1733_vm0, %v5587_v38 }
 0x6c0   :  { %v5591_v22 = vpop.f32.mrb[52].mxu0 }
 0x6c1   :  { %v5593_v58 = vpop.f32.mrb[53].mxu0  ;;  %v2221_v51 = vsel %vm1233_vm1, %v5591_v22, -inf }
 0x6c2   :  { %2222 = vmax.xlane.f32.xlu1 %v2221_v51  ;;  %v2218_v13 = vsel %vm1233_vm1, %v5593_v58, -inf }
 0x6c3   :  { %2219 = vmax.xlane.f32.xlu0 %v2218_v13 }
 0x6c4   :  { %v5599_v29 = vpop.f32.mrb[54].mxu0 }
 0x6c5   :  { %v5601_v39 = vpop.f32.mrb[55].mxu0  ;;  %v2227_v48 = vsel %vm1233_vm1, %v5599_v29, -inf }
 0x6c6   :  { %2228 = vmax.xlane.f32.xlu1 %v2227_v48  ;;  %v2224_v6 = vsel %vm1233_vm1, %v5601_v39, -inf }
 0x6c7   :  { %2225 = vmax.xlane.f32.xlu0 %v2224_v6 }
 0x6c8   :  { %v5607_v2 = vpop.f32.mrb[56].mxu0 }
 0x6c9   :  { %v5609_v3 = vpop.f32.mrb[57].mxu0  ;;  %v2233_v44 = vsel %vm1233_vm1, %v5607_v2, -inf }
 0x6ca   :  { %2234 = vmax.xlane.f32.xlu1 %v2233_v44  ;;  %v2230_v26 = vsel %vm1233_vm1, %v5609_v3, -inf }
 0x6cb   :  { %2231 = vmax.xlane.f32.xlu0 %v2230_v26 }
 0x6cc   :  { %v5615_v5 = vpop.f32.mrb[58].mxu0 }
 0x6cd   :  { %v5617_v19 = vpop.f32.mrb[59].mxu0  ;;  %v2239_v20 = vsel %vm1233_vm1, %v5615_v5, -inf }
 0x6ce   :  { %2240 = vmax.xlane.f32.xlu1 %v2239_v20  ;;  %v2236_v40 = vsel %vm1233_vm1, %v5617_v19, -inf }
 0x6cf   :  { %2237 = vmax.xlane.f32.xlu0 %v2236_v40 }
 0x6d0   :  { %v5623_v54 = vpop.f32.mrb[60].mxu0 }
 0x6d1   :  { %v5625_v9 = vpop.f32.mrb[61].mxu0  ;;  %v2245_v30 = vsel %vm1233_vm1, %v5623_v54, -inf }
 0x6d2   :  { %2246 = vmax.xlane.f32.xlu1 %v2245_v30  ;;  %v2242_v27 = vsel %vm1233_vm1, %v5625_v9, -inf }
 0x6d3   :  { %2243 = vmax.xlane.f32.xlu0 %v2242_v27 }
 0x6d4   :  { %v5631_v7 = vpop.f32.mrb[62].mxu0 }
 0x6d5   :  { %v5633_v37 = vpop.f32.mrb[63].mxu0  ;;  %v2251_v24 = vsel %vm1233_vm1, %v5631_v7, -inf }
 0x6d6   :  { %2252 = vmax.xlane.f32.xlu1 %v2251_v24  ;;  %v2248_v11 = vsel %vm1233_vm1, %v5633_v37, -inf }
 0x6d7   :  { %2249 = vmax.xlane.f32.xlu0 %v2248_v11 }
 0x6eb   :  { %v3756_v50 = vpop.f32.mrb[50].mxu1 }
 0x6ec   :  { %v1976_v32 = vadd.f32 %v3756_v50, %v5642_v35  ;;  %v1970_v61 = vpop.f32.mrb[51].mxu1 }
 0x6ed   :  { %v1971_v57 = vadd.f32 %v5642_v35, %v1970_v61 }
 0x6ee   :  { %2050 = vst [vmem:[#allocation17 + $0x8] sm:$0xff] %v1976_v32 }
 0x6ef   :  { %2049 = vst [vmem:[#allocation17] sm:$0xff] %v1971_v57  ;;  %v3759_v28 = vpop.f32.mrb[52].mxu1 }
 0x6f0   :  { %v1986_v31 = vadd.f32 %v3759_v28, %v5642_v35  ;;  %v1980_v42 = vpop.f32.mrb[53].mxu1 }
 0x6f1   :  { %v1981_v49 = vadd.f32 %v5642_v35, %v1980_v42 }
 0x6f2   :  { %2052 = vst [vmem:[#allocation17 + $0x18] sm:$0xff] %v1986_v31 }
 0x6f3   :  { %2051 = vst [vmem:[#allocation17 + $0x10] sm:$0xff] %v1981_v49  ;;  %v3762_v45 = vpop.f32.mrb[54].mxu1 }
 0x6f4   :  { %v1996_v41 = vadd.f32 %v3762_v45, %v5642_v35  ;;  %v1990_v34 = vpop.f32.mrb[55].mxu1 }
 0x6f5   :  { %v1991_v16 = vadd.f32 %v5642_v35, %v1990_v34 }
 0x6f6   :  { %2054 = vst [vmem:[#allocation17 + $0x28] sm:$0xff] %v1996_v41 }
 0x6f7   :  { %2053 = vst [vmem:[#allocation17 + $0x20] sm:$0xff] %v1991_v16  ;;  %v3765_v12 = vpop.f32.mrb[56].mxu1 }
 0x6f8   :  { %v2006_v25 = vadd.f32 %v3765_v12, %v5642_v35  ;;  %v2000_v1 = vpop.f32.mrb[57].mxu1 }
 0x6f9   :  { %v2001_v15 = vadd.f32 %v5642_v35, %v2000_v1 }
 0x6fa   :  { %2056 = vst [vmem:[#allocation17 + $0x38] sm:$0xff] %v2006_v25 }
 0x6fb   :  { %2055 = vst [vmem:[#allocation17 + $0x30] sm:$0xff] %v2001_v15  ;;  %v3768_v56 = vpop.f32.mrb[58].mxu1 }
 0x6fc   :  { %v2016_v18 = vadd.f32 %v3768_v56, %v5642_v35  ;;  %v2010_v53 = vpop.f32.mrb[59].mxu1 }
 0x6fd   :  { %v2011_v4 = vadd.f32 %v5642_v35, %v2010_v53 }
 0x6fe   :  { %2058 = vst [vmem:[#allocation17 + $0x48] sm:$0xff] %v2016_v18 }
 0x6ff   :  { %2057 = vst [vmem:[#allocation17 + $0x40] sm:$0xff] %v2011_v4  ;;  %v3771_v59 = vpop.f32.mrb[60].mxu1 }
 0x700   :  { %v2026_v63 = vadd.f32 %v3771_v59, %v5642_v35  ;;  %v2020_v17 = vpop.f32.mrb[61].mxu1 }
 0x701   :  { %v2021_v60 = vadd.f32 %v5642_v35, %v2020_v17 }
 0x702   :  { %2060 = vst [vmem:[#allocation17 + $0x58] sm:$0xff] %v2026_v63 }
 0x703   :  { %2059 = vst [vmem:[#allocation17 + $0x50] sm:$0xff] %v2021_v60  ;;  %v3774_v36 = vpop.f32.mrb[62].mxu1 }
 0x704   :  { %v2036_v62 = vadd.f32 %v3774_v36, %v5642_v35  ;;  %v2030_v46 = vpop.f32.mrb[63].mxu1 }
 0x705   :  { %v2031_v47 = vadd.f32 %v5642_v35, %v2030_v46 }
 0x706   :  { %2062 = vst [vmem:[#allocation17 + $0x68] sm:$0xff] %v2036_v62 }
 0x707   :  { %2061 = vst [vmem:[#allocation17 + $0x60] sm:$0xff] %v2031_v47  ;;  %v3777_v33 = vpop.f32.mrb[64].mxu1 }
 0x708   :  { %v2046_v52 = vadd.f32 %v3777_v33, %v5642_v35  ;;  %v2040_v51 = vpop.f32.mrb[65].mxu1 }
 0x709   :  { %v2041_v13 = vadd.f32 %v5642_v35, %v2040_v51 }
 0x70a   :  { %2064 = vst [vmem:[#allocation17 + $0x78] sm:$0xff] %v2046_v52 }
 0x70b   :  { %2063 = vst [vmem:[#allocation17 + $0x70] sm:$0xff] %v2041_v13  ;;  %v5660_v48 = vpop.f32.mrb[66].mxu1 }
 0x70c   :  { %v5662_v6 = vpop.f32.mrb[67].mxu1  ;;  %v2257_v44 = vsel %vm1233_vm1, %v5660_v48, -inf }
 0x70d   :  { %2258 = vmax.xlane.f32.xlu1 %v2257_v44  ;;  %v2254_v26 = vsel %vm1233_vm1, %v5662_v6, -inf }
 0x70e   :  { %2255 = vmax.xlane.f32.xlu0 %v2254_v26 }
 0x70f   :  { %v5668_v20 = vpop.f32.mrb[68].mxu1 }
 0x710   :  { %v5670_v40 = vpop.f32.mrb[69].mxu1  ;;  %v2263_v30 = vsel %vm1233_vm1, %v5668_v20, -inf }
 0x711   :  { %2264 = vmax.xlane.f32.xlu1 %v2263_v30  ;;  %v2260_v27 = vsel %vm1233_vm1, %v5670_v40, -inf }
 0x712   :  { %2261 = vmax.xlane.f32.xlu0 %v2260_v27 }
 0x74f   :  { %v2223_v24 = vpop.xlane.xlu1 %2222 }
 0x750   :  { %v2267_v11 = vsub.f32 %v5591_v22, %v2223_v24  ;;  %v2220_v50 = vpop.xlane.xlu0 %2219 }
 0x751   :  { %v2266_v32 = vsub.f32 %v5593_v58, %v2220_v50 }
 0x752   :  { %v2284_v61 = vmul.f32 1.442695, %v2267_v11 }
 0x753   :  { %v2282_v57 = vmul.f32 1.442695, %v2266_v32  ;;  %v2229_v28 = vpop.xlane.xlu1 %2228 }
 0x754   :  { %v2269_v31 = vsub.f32 %v5599_v29, %v2229_v28  ;;  %v2226_v42 = vpop.xlane.xlu0 %2225 }
 0x755   :  { %4312 = vpow2.f32 %v2282_v57  ;;  %v2268_v49 = vsub.f32 %v5601_v39, %v2226_v42 }
 0x756   :  { %4314 = vpow2.f32 %v2284_v61  ;;  %v2288_v45 = vmul.f32 1.442695, %v2269_v31 }
 0x757   :  { %v2286_v41 = vmul.f32 1.442695, %v2268_v49  ;;  %v2235_v34 = vpop.xlane.xlu1 %2234 }
 0x758   :  { %v2271_v16 = vsub.f32 %v5607_v2, %v2235_v34  ;;  %v2232_v12 = vpop.xlane.xlu0 %2231 }
 0x759   :  { %4316 = vpow2.f32 %v2286_v41  ;;  %v2270_v22 = vsub.f32 %v5609_v3, %v2232_v12 }
 0x75a   :  { %4318 = vpow2.f32 %v2288_v45  ;;  %v2292_v58 = vmul.f32 1.442695, %v2271_v16 }
 0x75b   :  { %v2290_v25 = vmul.f32 1.442695, %v2270_v22  ;;  %v2241_v1 = vpop.xlane.xlu1 %2240 }
 0x75c   :  { %v2273_v29 = vsub.f32 %v5615_v5, %v2241_v1  ;;  %v2238_v15 = vpop.xlane.xlu0 %2237 }
 0x75d   :  { %4320 = vpow2.f32 %v2290_v25  ;;  %v2272_v39 = vsub.f32 %v5617_v19, %v2238_v15 }
 0x75e   :  { %4322 = vpow2.f32 %v2292_v58  ;;  %v2296_v56 = vmul.f32 1.442695, %v2273_v29 }
 0x75f   :  { %v4313_v18 = vpop.eup %4312  ;;  %v2294_v53 = vmul.f32 1.442695, %v2272_v39  ;;  %v2247_v4 = vpop.xlane.xlu1 %2246 }
 0x760   :  { %v4315_v2 = vpop.eup %4314  ;;  %v2275_v59 = vsub.f32 %v5623_v54, %v2247_v4  ;;  %3850 = vmatprep.mubr.msk.f32.mxu0 %vm1233_vm1, %v4313_v18  ;;  %v2244_v3 = vpop.xlane.xlu0 %2243  ;;  %3818 = vmatprep.mubr.msk.f32.mxu1 %vm1233_vm1, %v4313_v18 }
 0x761   :  { %4324 = vpow2.f32 %v2294_v53  ;;  %v2274_v5 = vsub.f32 %v5625_v9, %v2244_v3  ;;  %3819 = vmatmul.mubr.msk.f32.vlgmr.msra.gmra.mrb[70].mxu1 %vm1233_vm1, %v4315_v2  ;;  %3851 = vmatmul.mubr.msk.f32.vlgmr.msra.gmra.mrb[64].mxu0 %vm1233_vm1, %v4315_v2 }
 0x762   :  { %4326 = vpow2.f32 %v2296_v56  ;;  %v2300_v19 = vmul.f32 1.442695, %v2275_v59  ;;  %3875 = vmatpush3.msk.msra.mxu1 %vm1733_vm0, %v5587_v38  ;;  %4135 = vmatpush3.bf16.msra.mxu0 %v5242_v0 }
 0x763   :  { %v4317_v54 = vpop.eup %4316  ;;  %v2298_v63 = vmul.f32 1.442695, %v2274_v5  ;;  %v2253_v17 = vpop.xlane.xlu1 %2252  ;;  %4137 = vmatprep.subr.bf16.mxu0 %v5345_v55 }
 0x764   :  { %v4319_v60 = vpop.eup %4318  ;;  %v2277_v36 = vsub.f32 %v5631_v7, %v2253_v17  ;;  %3853 = vmatprep.mubr.msk.f32.mxu0 %vm1233_vm1, %v4317_v54  ;;  %v2250_v9 = vpop.xlane.xlu0 %2249  ;;  %3821 = vmatprep.mubr.msk.f32.mxu1 %vm1233_vm1, %v4317_v54 }
 0x765   :  { %4328 = vpow2.f32 %v2298_v63  ;;  %v2276_v62 = vsub.f32 %v5633_v37, %v2250_v9  ;;  %3822 = vmatmul.mubr.msk.f32.gmra.mrb[72].mxu1 %vm1233_vm1, %v4319_v60  ;;  %3854 = vmatmul.mubr.msk.f32.gmra.mrb[66].mxu0 %vm1233_vm1, %v4319_v60 }
 0x766   :  { %4330 = vpow2.f32 %v2300_v19  ;;  %v2304_v0 = vmul.f32 1.442695, %v2277_v36  ;;  %4139 = vmatpush3.bf16.msra.mxu0 %v5345_v55 }
 0x767   :  { %v4321_v38 = vpop.eup %4320  ;;  %v2302_v46 = vmul.f32 1.442695, %v2276_v62  ;;  %4141 = vmatprep.subr.bf16.mxu0 %v5363_v14 }
 0x768   :  { %v4323_v7 = vpop.eup %4322  ;;  %3824 = vmatprep.mubr.msk.f32.mxu1 %vm1233_vm1, %v4321_v38  ;;  %3856 = vmatprep.mubr.msk.f32.mxu0 %vm1233_vm1, %v4321_v38 }
 0x769   :  { %4332 = vpow2.f32 %v2302_v46  ;;  %3825 = vmatmul.mubr.msk.f32.gmra.mrb[74].mxu1 %vm1233_vm1, %v4323_v7  ;;  %3857 = vmatmul.mubr.msk.f32.gmra.mrb[68].mxu0 %vm1233_vm1, %v4323_v7 }
 0x76a   :  { %4334 = vpow2.f32 %v2304_v0  ;;  %4143 = vmatpush3.bf16.msra.mxu0 %v5363_v14 }
 0x76b   :  { %v4325_v37 = vpop.eup %4324  ;;  %4145 = vmatprep.subr.bf16.mxu0 %v5381_v43 }
 0x76c   :  { %v4327_v55 = vpop.eup %4326  ;;  %3827 = vmatprep.mubr.msk.f32.mxu1 %vm1233_vm1, %v4325_v37  ;;  %3859 = vmatprep.mubr.msk.f32.mxu0 %vm1233_vm1, %v4325_v37 }
 0x76d   :  { %3828 = vmatmul.mubr.msk.f32.gmra.mrb[76].mxu1 %vm1233_vm1, %v4327_v55  ;;  %3860 = vmatmul.mubr.msk.f32.gmra.mrb[70].mxu0 %vm1233_vm1, %v4327_v55 }
 0x76e   :  { %4147 = vmatpush3.bf16.msra.mxu0 %v5381_v43 }
 0x76f   :  { %v4329_v47 = vpop.eup %4328  ;;  %4149 = vmatprep.subr.bf16.mxu0 %v5399_v21 }
 0x770   :  { %v4331_v33 = vpop.eup %4330  ;;  %3830 = vmatprep.mubr.msk.f32.mxu1 %vm1233_vm1, %v4329_v47  ;;  %3862 = vmatprep.mubr.msk.f32.mxu0 %vm1233_vm1, %v4329_v47 }
 0x771   :  { %3831 = vmatmul.mubr.msk.f32.gmra.mrb[78].mxu1 %vm1233_vm1, %v4331_v33  ;;  %3863 = vmatmul.mubr.msk.f32.gmra.mrb[72].mxu0 %vm1233_vm1, %v4331_v33 }
 0x772   :  { %4151 = vmatpush3.bf16.msra.mxu0 %v5399_v21 }
 0x773   :  { %v4333_v14 = vpop.eup %4332  ;;  %4153 = vmatprep.subr.bf16.mxu0 %v5417_v8 }
 0x774   :  { %v4335_v52 = vpop.eup %4334  ;;  %3833 = vmatprep.mubr.msk.f32.mxu1 %vm1233_vm1, %v4333_v14  ;;  %3865 = vmatprep.mubr.msk.f32.mxu0 %vm1233_vm1, %v4333_v14 }
 0x775   :  { %3834 = vmatmul.mubr.msk.f32.gmra.mrb[80].mxu1 %vm1233_vm1, %v4335_v52  ;;  %3866 = vmatmul.mubr.msk.f32.gmra.mrb[74].mxu0 %vm1233_vm1, %v4335_v52 }
 0x776   :  { %4155 = vmatpush3.bf16.msra.mxu0 %v5417_v8 }
 0x777   :  { %4157 = vmatprep.subr.bf16.mxu0 %v5426_v23 }
 0x77a   :  { %4159 = vmatpush3.bf16.msra.mxu0 %v5426_v23 }
 0x77b   :  { %4161 = vmatprep.subr.bf16.mxu0 %v5435_v10 }
 0x77e   :  { %4163 = vmatpush3.bf16.msra.mxu0 %v5435_v10 }
 0x79a   :  { %v2259_v43 = vpop.xlane.xlu1 %2258 }
 0x79b   :  { %v2279_v21 = vsub.f32 %v5660_v48, %v2259_v43  ;;  %v2256_v51 = vpop.xlane.xlu0 %2255 }
 0x79c   :  { %v2278_v13 = vsub.f32 %v5662_v6, %v2256_v51 }
 0x79d   :  { %v2308_v44 = vmul.f32 1.442695, %v2279_v21 }
 0x79e   :  { %v2306_v26 = vmul.f32 1.442695, %v2278_v13  ;;  %v2265_v30 = vpop.xlane.xlu1 %2264 }
 0x79f   :  { %v2281_v27 = vsub.f32 %v5668_v20, %v2265_v30  ;;  %v2262_v8 = vpop.xlane.xlu0 %2261 }
 0x7a0   :  { %4336 = vpow2.f32 %v2306_v26  ;;  %v2280_v24 = vsub.f32 %v5670_v40, %v2262_v8 }
 0x7a1   :  { %4338 = vpow2.f32 %v2308_v44  ;;  %v2312_v23 = vmul.f32 1.442695, %v2281_v27 }
 0x7a2   :  { %v2310_v11 = vmul.f32 1.442695, %v2280_v24 }
 0x7a4   :  { %4340 = vpow2.f32 %v2310_v11 }
 0x7a5   :  { %4342 = vpow2.f32 %v2312_v23 }
 0x7aa   :  { %v4337_v10 = vpop.eup %4336 }
 0x7ab   :  { %v4339_v50 = vpop.eup %4338  ;;  %3836 = vmatprep.mubr.msk.f32.mxu1 %vm1233_vm1, %v4337_v10  ;;  %3868 = vmatprep.mubr.msk.f32.mxu0 %vm1233_vm1, %v4337_v10 }
 0x7ac   :  { %3837 = vmatmul.mubr.msk.f32.gmra.mrb[82].mxu1 %vm1233_vm1, %v4339_v50  ;;  %3869 = vmatmul.mubr.msk.f32.gmra.mrb[76].mxu0 %vm1233_vm1, %v4339_v50 }
 0x7ae   :  { %v4341_v48 = vpop.eup %4340 }
 0x7af   :  { %v4343_v6 = vpop.eup %4342  ;;  %3839 = vmatprep.mubr.msk.f32.mxu1 %vm1233_vm1, %v4341_v48  ;;  %3871 = vmatprep.mubr.msk.f32.mxu0 %vm1233_vm1, %v4341_v48 }
 0x7b0   :  { %3840 = vmatmul.mubr.msk.f32.gmra.mrb[84].mxu1 %vm1233_vm1, %v4343_v6  ;;  %3872 = vmatmul.mubr.msk.f32.gmra.mrb[78].mxu0 %vm1233_vm1, %v4343_v6 }
 0x834   :  { %v3820_v20 = vpop.f32.mrb[70].mxu1  ;;  %v5741_v40 = vpop.f32.mrb[64].mxu0 }
 0x835   :  { %v2428_v32 = vpop.f32.mrb[71].mxu1  ;;  %v5743_v61 = vpop.f32.mrb[65].mxu0 }
 0x836   :  { %4344 = vrcp.f32 %v2428_v32 }
 0x837   :  { %4346 = vrcp.f32 %v3820_v20 }
 0x838   :  { %v3823_v57 = vpop.f32.mrb[72].mxu1  ;;  %v5745_v28 = vpop.f32.mrb[66].mxu0 }
 0x839   :  { %v2438_v31 = vpop.f32.mrb[73].mxu1  ;;  %v5747_v42 = vpop.f32.mrb[67].mxu0 }
 0x83a   :  { %4348 = vrcp.f32 %v2438_v31 }
 0x83b   :  { %4350 = vrcp.f32 %v3823_v57 }
 0x83c   :  { %v3826_v49 = vpop.f32.mrb[74].mxu1  ;;  %v5749_v45 = vpop.f32.mrb[68].mxu0 }
 0x83d   :  { %v2448_v41 = vpop.f32.mrb[75].mxu1  ;;  %v5751_v34 = vpop.f32.mrb[69].mxu0 }
 0x83e   :  { %4352 = vrcp.f32 %v2448_v41 }
 0x83f   :  { %4354 = vrcp.f32 %v3826_v49 }
 0x840   :  { %v4345_v16 = vpop.eup %4344  ;;  %v3829_v12 = vpop.f32.mrb[76].mxu1 }
 0x841   :  { %v5753_v22 = vpop.f32.mrb[70].mxu0  ;;  %v4347_v58 = vpop.eup %4346  ;;  %3876 = vmatprep.mubr.msk.f32.mxu1 %vm1684_vm2, %v4345_v16 }
 0x842   :  { %v2458_v25 = vpop.f32.mrb[77].mxu1  ;;  %v5755_v1 = vpop.f32.mrb[71].mxu0  ;;  %3877 = vmatmul.mubr.msk.f32.vlgmr.msra.gmra.mrb[86].mxu1 %vm1684_vm2, %v4347_v58 }
 0x843   :  { %4356 = vrcp.f32 %v2458_v25 }
 0x844   :  { %4358 = vrcp.f32 %v3829_v12  ;;  %v4349_v29 = vpop.eup %4348  ;;  %v3832_v15 = vpop.f32.mrb[78].mxu1 }
 0x845   :  { %v5759_v39 = vpop.f32.mrb[72].mxu0  ;;  %v4351_v56 = vpop.eup %4350  ;;  %3879 = vmatprep.mubr.msk.f32.mxu1 %vm1684_vm2, %v4349_v29 }
 0x846   :  { %v2468_v18 = vpop.f32.mrb[79].mxu1  ;;  %v5761_v53 = vpop.f32.mrb[73].mxu0  ;;  %3880 = vmatmul.mubr.msk.f32.gmra.mrb[88].mxu1 %vm1684_vm2, %v4351_v56 }
 0x847   :  { %4360 = vrcp.f32 %v2468_v18 }
 0x848   :  { %4362 = vrcp.f32 %v3832_v15  ;;  %v4353_v4 = vpop.eup %4352  ;;  %v3835_v2 = vpop.f32.mrb[80].mxu1 }
 0x849   :  { %v5765_v59 = vpop.f32.mrb[74].mxu0  ;;  %v4355_v3 = vpop.eup %4354  ;;  %3882 = vmatprep.mubr.msk.f32.mxu1 %vm1684_vm2, %v4353_v4 }
 0x84a   :  { %v2478_v5 = vpop.f32.mrb[81].mxu1  ;;  %v5767_v19 = vpop.f32.mrb[75].mxu0  ;;  %3883 = vmatmul.mubr.msk.f32.gmra.mrb[90].mxu1 %vm1684_vm2, %v4355_v3 }
 0x84b   :  { %4364 = vrcp.f32 %v2478_v5 }
 0x84c   :  { %4366 = vrcp.f32 %v3835_v2 }
 0x84d   :  { %v4357_v54 = vpop.eup %4356 }
 0x84e   :  { %v4359_v63 = vpop.eup %4358  ;;  %3885 = vmatprep.mubr.msk.f32.mxu1 %vm1684_vm2, %v4357_v54 }
 0x84f   :  { %3886 = vmatmul.mubr.msk.f32.gmra.mrb[92].mxu1 %vm1684_vm2, %v4359_v63 }
 0x851   :  { %v4361_v17 = vpop.eup %4360 }
 0x852   :  { %v4363_v60 = vpop.eup %4362  ;;  %3888 = vmatprep.mubr.msk.f32.mxu1 %vm1684_vm2, %v4361_v17 }
 0x853   :  { %3889 = vmatmul.mubr.msk.f32.gmra.mrb[94].mxu1 %vm1684_vm2, %v4363_v60 }
 0x855   :  { %v4365_v36 = vpop.eup %4364 }
 0x856   :  { %v4367_v9 = vpop.eup %4366  ;;  %3891 = vmatprep.mubr.msk.f32.mxu1 %vm1684_vm2, %v4365_v36 }
 0x857   :  { %3892 = vmatmul.mubr.msk.f32.gmra.mrb[96].mxu1 %vm1684_vm2, %v4367_v9 }
 0x87f   :  { %v3838_v62 = vpop.f32.mrb[82].mxu1  ;;  %v3870_v0 = vpop.f32.mrb[76].mxu0 }
 0x880   :  { %v2488_v38 = vpop.f32.mrb[83].mxu1  ;;  %v2649_v46 = vpop.f32.mrb[77].mxu0 }
 0x881   :  { %4368 = vrcp.f32 %v2488_v38 }
 0x882   :  { %4370 = vrcp.f32 %v3838_v62 }
 0x883   :  { %v3841_v7 = vpop.f32.mrb[84].mxu1  ;;  %v3873_v37 = vpop.f32.mrb[78].mxu0 }
 0x884   :  { %v2498_v55 = vpop.f32.mrb[85].mxu1  ;;  %v2659_v47 = vpop.f32.mrb[79].mxu0 }
 0x885   :  { %4372 = vrcp.f32 %v2498_v55 }
 0x886   :  { %4374 = vrcp.f32 %v3841_v7 }
 0x88b   :  { %v4369_v33 = vpop.eup %4368 }
 0x88c   :  { %v4371_v14 = vpop.eup %4370  ;;  %3894 = vmatprep.mubr.msk.f32.mxu1 %vm1684_vm2, %v4369_v33 }
 0x88d   :  { %3895 = vmatmul.mubr.msk.f32.gmra.mrb[98].mxu1 %vm1684_vm2, %v4371_v14 }
 0x88f   :  { %v4373_v52 = vpop.eup %4372 }
 0x890   :  { %v4375_v43 = vpop.eup %4374  ;;  %3897 = vmatprep.mubr.msk.f32.mxu1 %vm1684_vm2, %v4373_v52 }
 0x891   :  { %3898 = vmatmul.mubr.msk.f32.gmra.mrb[100].mxu1 %vm1684_vm2, %v4375_v43 }
 0x915   :  { %v3878_v21 = vpop.f32.mrb[86].mxu1 }
 0x916   :  { %v2862_v51 = vmul.f32 %v3878_v21, %v5741_v40  ;;  %v2782_v13 = vpop.f32.mrb[87].mxu1 }
 0x917   :  { %v2861_v44 = vmul.f32 %v2782_v13, %v5743_v61 }
 0x919   :  { %v3881_v26 = vpop.f32.mrb[88].mxu1  ;;  %3932 = vmatprep.mubr.f32.mxu0 %v2861_v44 }
 0x91a   :  { %v2864_v30 = vmul.f32 %v3881_v26, %v5745_v28  ;;  %v2792_v27 = vpop.f32.mrb[89].mxu1  ;;  %3933 = vmatmul.mubr.f32.vlgmr.msra.gmra.mrb[80].mxu0 %v2862_v51 }
 0x91b   :  { %v2863_v8 = vmul.f32 %v2792_v27, %v5747_v42 }
 0x91d   :  { %v3884_v24 = vpop.f32.mrb[90].mxu1  ;;  %3935 = vmatprep.mubr.f32.mxu0 %v2863_v8 }
 0x91e   :  { %v2866_v23 = vmul.f32 %v3884_v24, %v5749_v45  ;;  %v2802_v11 = vpop.f32.mrb[91].mxu1  ;;  %3936 = vmatmul.mubr.f32.gmra.mrb[82].mxu0 %v2864_v30 }
 0x91f   :  { %v2865_v10 = vmul.f32 %v2802_v11, %v5751_v34 }
 0x921   :  { %3938 = vmatprep.mubr.f32.mxu0 %v2865_v10 }
 0x922   :  { %v3887_v50 = vpop.f32.mrb[92].mxu1  ;;  %3939 = vmatmul.mubr.f32.gmra.mrb[84].mxu0 %v2866_v23 }
 0x923   :  { %v2868_v48 = vmul.f32 %v3887_v50, %v5753_v22  ;;  %v2812_v6 = vpop.f32.mrb[93].mxu1 }
 0x924   :  { %v2867_v20 = vmul.f32 %v2812_v6, %v5755_v1 }
 0x926   :  { %v3890_v40 = vpop.f32.mrb[94].mxu1  ;;  %3941 = vmatprep.mubr.f32.mxu0 %v2867_v20 }
 0x927   :  { %v2870_v32 = vmul.f32 %v3890_v40, %v5759_v39  ;;  %v2822_v61 = vpop.f32.mrb[95].mxu1  ;;  %3942 = vmatmul.mubr.f32.gmra.mrb[86].mxu0 %v2868_v48 }
 0x928   :  { %v2869_v57 = vmul.f32 %v2822_v61, %v5761_v53 }
 0x92a   :  { %v3893_v28 = vpop.f32.mrb[96].mxu1  ;;  %3944 = vmatprep.mubr.f32.mxu0 %v2869_v57 }
 0x92b   :  { %v2872_v31 = vmul.f32 %v3893_v28, %v5765_v59  ;;  %v2832_v42 = vpop.f32.mrb[97].mxu1  ;;  %3945 = vmatmul.mubr.f32.gmra.mrb[88].mxu0 %v2870_v32 }
 0x92c   :  { %v2871_v49 = vmul.f32 %v2832_v42, %v5767_v19 }
 0x92e   :  { %3947 = vmatprep.mubr.f32.mxu0 %v2871_v49 }
 0x92f   :  { %3948 = vmatmul.mubr.f32.gmra.mrb[90].mxu0 %v2872_v31 }
 0x960   :  { %v3896_v45 = vpop.f32.mrb[98].mxu1 }
 0x961   :  { %v2874_v41 = vmul.f32 %v3896_v45, %v3870_v0  ;;  %v2842_v34 = vpop.f32.mrb[99].mxu1 }
 0x962   :  { %v2873_v16 = vmul.f32 %v2842_v34, %v2649_v46 }
 0x964   :  { %v3899_v12 = vpop.f32.mrb[100].mxu1  ;;  %3950 = vmatprep.mubr.f32.mxu0 %v2873_v16 }
 0x965   :  { %v2876_v22 = vmul.f32 %v3899_v12, %v3873_v37  ;;  %v2852_v58 = vpop.f32.mrb[101].mxu1  ;;  %3951 = vmatmul.mubr.f32.gmra.mrb[92].mxu0 %v2874_v41 }
 0x966   :  { %v2875_v25 = vmul.f32 %v2852_v58, %v2659_v47 }
 0x968   :  { %3953 = vmatprep.mubr.f32.mxu0 %v2875_v25 }
 0x969   :  { %3954 = vmatmul.mubr.f32.gmra.mrb[94].mxu0 %v2876_v22 }
 0x9ed   :  { %v3934_v1 = vpop.f32.mrb[80].mxu0 }
 0x9ee   :  { %v2949_v29 = vadd.f32 %v3934_v1, %v5642_v35  ;;  %v2943_v15 = vpop.f32.mrb[81].mxu0 }
 0x9ef   :  { %v2944_v39 = vadd.f32 %v5642_v35, %v2943_v15 }
 0x9f0   :  { %3023 = vst [vmem:[#allocation17 + $0x88] sm:$0xff] %v2949_v29 }
 0x9f1   :  { %3022 = vst [vmem:[#allocation17 + $0x80] sm:$0xff] %v2944_v39  ;;  %v3937_v56 = vpop.f32.mrb[82].mxu0 }
 0x9f2   :  { %v2959_v18 = vadd.f32 %v3937_v56, %v5642_v35  ;;  %v2953_v53 = vpop.f32.mrb[83].mxu0 }
 0x9f3   :  { %v2954_v4 = vadd.f32 %v5642_v35, %v2953_v53 }
 0x9f4   :  { %3025 = vst [vmem:[#allocation17 + $0x98] sm:$0xff] %v2959_v18 }
 0x9f5   :  { %3024 = vst [vmem:[#allocation17 + $0x90] sm:$0xff] %v2954_v4  ;;  %v3940_v2 = vpop.f32.mrb[84].mxu0 }
 0x9f6   :  { %v2969_v59 = vadd.f32 %v3940_v2, %v5642_v35  ;;  %v2963_v3 = vpop.f32.mrb[85].mxu0 }
 0x9f7   :  { %v2964_v5 = vadd.f32 %v5642_v35, %v2963_v3 }
 0x9f8   :  { %3027 = vst [vmem:[#allocation17 + $0xa8] sm:$0xff] %v2969_v59 }
 0x9f9   :  { %3026 = vst [vmem:[#allocation17 + $0xa0] sm:$0xff] %v2964_v5 }
 0x9fa   :  { %v3943_v19 = vpop.f32.mrb[86].mxu0 }
 0x9fb   :  { %v2979_v54 = vadd.f32 %v3943_v19, %v5642_v35  ;;  %v2973_v63 = vpop.f32.mrb[87].mxu0 }
 0x9fc   :  { %v2974_v17 = vadd.f32 %v5642_v35, %v2973_v63 }
 0x9fd   :  { %3029 = vst [vmem:[#allocation17 + $0xb8] sm:$0xff] %v2979_v54 }
 0x9fe   :  { %3028 = vst [vmem:[#allocation17 + $0xb0] sm:$0xff] %v2974_v17  ;;  %v3946_v60 = vpop.f32.mrb[88].mxu0 }
 0x9ff   :  { %v2989_v36 = vadd.f32 %v3946_v60, %v5642_v35  ;;  %v2983_v9 = vpop.f32.mrb[89].mxu0 }
 0xa00   :  { %v2984_v62 = vadd.f32 %v5642_v35, %v2983_v9 }
 0xa01   :  { %3031 = vst [vmem:[#allocation17 + $0xc8] sm:$0xff] %v2989_v36 }
 0xa02   :  { %3030 = vst [vmem:[#allocation17 + $0xc0] sm:$0xff] %v2984_v62  ;;  %v3949_v0 = vpop.f32.mrb[90].mxu0 }
 0xa03   :  { %v2999_v38 = vadd.f32 %v3949_v0, %v5642_v35  ;;  %v2993_v46 = vpop.f32.mrb[91].mxu0 }
 0xa04   :  { %v2994_v7 = vadd.f32 %v5642_v35, %v2993_v46 }
 0xa05   :  { %3033 = vst [vmem:[#allocation17 + $0xd8] sm:$0xff] %v2999_v38 }
 0xa06   :  { %3032 = vst [vmem:[#allocation17 + $0xd0] sm:$0xff] %v2994_v7 }
 0xa38   :  { %v3952_v37 = vpop.f32.mrb[92].mxu0 }
 0xa39   :  { %v3009_v55 = vadd.f32 %v3952_v37, %v5642_v35  ;;  %v3003_v47 = vpop.f32.mrb[93].mxu0 }
 0xa3a   :  { %v3004_v33 = vadd.f32 %v5642_v35, %v3003_v47 }
 0xa3b   :  { %3035 = vst [vmem:[#allocation17 + $0xe8] sm:$0xff] %v3009_v55 }
 0xa3c   :  { %3034 = vst [vmem:[#allocation17 + $0xe0] sm:$0xff] %v3004_v33  ;;  %v3955_v14 = vpop.f32.mrb[94].mxu0 }
 0xa3d   :  { %v3019_v52 = vadd.f32 %v3955_v14, %v5642_v35  ;;  %v3013_v43 = vpop.f32.mrb[95].mxu0 }
 0xa3e   :  { %v3014_v21 = vadd.f32 %v5642_v35, %v3013_v43 }
 0xa3f   :  { %3037 = vst [vmem:[#allocation17 + $0xf8] sm:$0xff] %v3019_v52 }
 0xa40   :  { %3036 = vst [vmem:[#allocation17 + $0xf0] sm:$0xff] %v3014_v21 }
 0xa41   :  { %4591 = shalt.err (!%p4588_p6)
}
 0xa42   :  { %s4592_s19 = scalar_lea.hbm %s5839_s15, 4096 }
 0xa43   :  { %p4593_p7 = scmp.ne.s32.totalorder %s5839_s15, %s4592_s19  ;;  %p4596_p8 = scmp.lt.u32.totalorder %s4592_s19, %s5839_s15 }
 0xa45   :  { %p4598_p9 = pnand %p4596_p8, %p4593_p7 }
 0xa47   :  { %4601 = shalt.err (!%p4598_p9)
}
 0xa48   :  { %3049 = dma.vmem_to_hbm [thread:$0]  %s3044_s2, 4096, %s5839_s15, [#allocation4], %s4616_s30, %s4616_s30, %s4617_s16  }
 0xa49   :  { %4612 = dma.done.wait [#allocation4], 4096  }
 0xa4a   :  { %4613 = vsyncadd [#allocation4], 4294963200 }
 0xa4b   :  { %3053 = vsyncpa [#allocation3], 1 }
 0xa4c   :  { %3054 = vsyncpa [#allocation6], 1 }
 0xa4d   :  { %3055 = vsyncpa [#allocation9], 1 }
 0xa4e   :  { %3056 = vsyncpa [#allocation12], 1 }
 0xa4f   :  { %3057 = vsyncpa [#allocation15], 1 }
 0xa50   :  { %3058 = vsyncpa [#allocation4], 1 }

</bundles_post_ra>
